<compile_context>
chip_gen: v5e
topology: v5e:2x2
jax: 0.10.0
libtpu: 0.0.40
codegen_flags: <defaults>
</compile_context>

<pallas_src>
import functools

import jax
import jax.numpy as jnp
import numpy as np
from jax.experimental import pallas as pl
from jax.experimental.pallas import tpu as pltpu

NEG_SLOPE = 0.01  # torch.nn.LeakyReLU() default


# ---------------------------------------------------------------------------
# Pallas kernel: one (batch, row-tile) step of the fused transposed conv
# ---------------------------------------------------------------------------
def _upscale_kernel(x_ref, halo_ref, w0_ref, wc1_ref, wc2_ref, b_ref, o_ref, *,
                    TH, W, Cin, Cout, neg_slope):
    x = x_ref[...]                                 # (TH, W, Cin)
    top = halo_ref[0][None]                        # row above tile (zero at image top)
    bot = halo_ref[1][None]                        # row below tile (zero at image bottom)
    xe = jnp.concatenate([top, x, bot], axis=0)    # (TH+2, W, Cin)

    # dx-fold (in-kernel zero padding of columns): per output pixel l stack
    # channels of x[:, l-1], x[:, l], x[:, l+1] along the lane axis.
    zcol = jnp.zeros((TH + 2, 1, Cin), xe.dtype)
    left = jnp.concatenate([zcol, xe[:, :W - 1, :]], axis=1)
    right = jnp.concatenate([xe[:, 1:, :], zcol], axis=1)
    a = jnp.concatenate([left, xe, right], axis=-1)          # (TH+2, W, 3*Cin)

    s0 = a[0:TH].reshape(TH * W, 3 * Cin)          # contributions from input row m-1
    s1 = a[1:TH + 1].reshape(TH * W, 3 * Cin)      # input row m
    s2 = a[2:TH + 2].reshape(TH * W, 3 * Cin)      # input row m+1

    f32 = jnp.float32
    # Packed dots: wc1/wc2 columns are [even-row taps | odd-row taps] -> N=4*Cout.
    acc12 = jnp.dot(s1, wc1_ref[...], preferred_element_type=f32)
    acc12 = acc12 + jnp.dot(s2, wc2_ref[...], preferred_element_type=f32)
    # Even output rows also need the ky=4 tap from input row m-1 (half-width dot).
    acc_e = acc12[:, :2 * Cout] + jnp.dot(s0, w0_ref[...],
                                          preferred_element_type=f32)
    acc_o = acc12[:, 2 * Cout:]

    b2 = b_ref[...]                                # (1, 2*Cout), f32
    ye = acc_e + b2
    yo = acc_o + b2
    ye = jnp.where(ye > 0, ye, neg_slope * ye)     # LeakyReLU on f32 accumulators
    yo = jnp.where(yo > 0, yo, neg_slope * yo)

    # Direct parity stores into the interleaved output slab (no stack+reshape copy).
    o_ref[:, 0] = ye.reshape(TH, W, 2 * Cout).astype(o_ref.dtype)   # rows oy = 2m
    o_ref[:, 1] = yo.reshape(TH, W, 2 * Cout).astype(o_ref.dtype)   # rows oy = 2m+1


# ---------------------------------------------------------------------------
# Weight folding: PyTorch ConvTranspose2d weight (Cin, Cout, 5, 5) -> the
# polyphase / dx-folded matmul weights used by the kernel.
# ---------------------------------------------------------------------------
def _fold_weights(wt):
    Cin, Cout, KH, KW = wt.shape
    assert KH == 5 and KW == 5, "only k_size=5 (module default) is supported"
    zero = jnp.zeros((Cin, Cout), wt.dtype)

    def m(ky, kx):
        return wt[:, :, ky, kx]                    # (Cin, Cout)

    def row_block(ky):
        # rows of the folded K dim: input column l-1, l, l+1
        even_col = jnp.concatenate([m(ky, 4), m(ky, 2), m(ky, 0)], axis=0)  # ox even
        odd_col = jnp.concatenate([zero, m(ky, 3), m(ky, 1)], axis=0)       # ox odd
        return jnp.concatenate([even_col, odd_col], axis=1)                 # (3*Cin, 2*Cout)

    # s0 (row m-1) only feeds even output rows (ky=4); s1/s2 feed both parities,
    # packed side by side so the MXU sees N = 4*Cout.
    w0 = row_block(4)                                             # (3Cin, 2Cout)
    wc1 = jnp.concatenate([row_block(2), row_block(3)], axis=1)   # (3Cin, 4Cout)
    wc2 = jnp.concatenate([row_block(0), row_block(1)], axis=1)   # (3Cin, 4Cout)
    return w0, wc1, wc2


# ---------------------------------------------------------------------------
# Generation-aware VMEM limit + row-tile selection
# ---------------------------------------------------------------------------
def _vmem_limit_bytes():
    cap = 128 * 1024 * 1024
    try:  # v5e/v6e: 128 MiB, v7x: 64 MiB per TensorCore
        cap = int(pltpu.get_tpu_info().vmem_capacity_bytes)
    except Exception:
        pass
    # leave headroom for compiler scratch / double buffers; cap well below 128 MiB
    return int(min(max(cap - 20 * 1024 * 1024, 32 * 1024 * 1024), 96 * 1024 * 1024))


def _pick_row_tile(H, W, Cin, Cout, cdt_size, out_size, vmem_limit, N):
    # Live-set per input row inside the kernel (conservative):
    #   x tile + xe/left/right + folded slab a (3x) + possible s0-s2 copies (9x)
    #   + double-buffered input block, f32 acc12/acc_e + ye/yo, double-buffered
    #   output block (2 output rows per input row).
    per_row = W * (
        20 * Cin * cdt_size          # input-side slabs
        + 10 * Cout * 4              # f32 accumulators (acc12 + acc_e + ye + yo)
        + 8 * Cout * out_size        # double-buffered output rows
    )
    budget = int(0.35 * vmem_limit)
    th = int(max(1, min(H, budget // max(per_row, 1))))
    if N == 1 and H >= 2:
        # batch 1: keep at least two row tiles so the megacore split (v7x) has work
        th = max(1, min(th, H // 2))
    while H % th:
        th -= 1
    return th


# ---------------------------------------------------------------------------
# NHWC core (fast path: no layout transposes anywhere)
# ---------------------------------------------------------------------------
def _upscaling_nhwc_impl(x_nhwc, weight, bias, *, row_tile, compute_dtype,
                         out_dtype, non_linearity):
    N, H, W, Cin = x_nhwc.shape
    Cin_w, Cout, KH, KW = weight.shape
    assert Cin_w == Cin and (KH, KW) == (5, 5)
    assert W >= 2

    if non_linearity == "leaky_relu":
        neg_slope = NEG_SLOPE
    elif non_linearity == "relu":
        neg_slope = 0.0
    elif non_linearity == "no":
        neg_slope = 1.0
    else:
        raise NotImplementedError(f"non_linearity={non_linearity!r} (e.g. GDN) "
                                  "is not implemented")
    if bias is None:
        bias = jnp.zeros((Cout,), jnp.float32)     # 'transposed_no_bias' mode

    cdt = jnp.dtype(compute_dtype)
    odt = jnp.dtype(out_dtype) if out_dtype is not None else jnp.dtype(x_nhwc.dtype)

    xh = x_nhwc.astype(cdt)                        # bf16 storage by default
    w0, wc1, wc2 = _fold_weights(weight)
    w0, wc1, wc2 = w0.astype(cdt), wc1.astype(cdt), wc2.astype(cdt)
    b2 = jnp.concatenate([bias, bias])[None, :].astype(jnp.float32)  # (1, 2*Cout)

    vmem_limit = _vmem_limit_bytes()
    TH = row_tile if row_tile is not None else _pick_row_tile(
        H, W, Cin, Cout, cdt.itemsize, odt.itemsize, vmem_limit, N)
    assert H % TH == 0, "row_tile must divide H"
    T = H // TH

    # 1-row halos per row tile (zero rows at true image borders)
    zero_row = jnp.zeros((N, 1, W, Cin), cdt)
    above = jnp.concatenate([zero_row, xh[:, TH - 1:H - 1:TH]], axis=1)  # (N, T, W, Cin)
    below = jnp.concatenate([xh[:, TH:H:TH], zero_row], axis=1)          # (N, T, W, Cin)
    halo = jnp.stack([above, below], axis=2).reshape(N * 2 * T, W, Cin)

    # Flatten batch*rows so the grid is a single "parallel" axis (megacore-friendly)
    x2 = xh.reshape(N * H, W, Cin)

    kern = functools.partial(_upscale_kernel, TH=TH, W=W, Cin=Cin, Cout=Cout,
                             neg_slope=neg_slope)

    flops = 2 * N * H * W * 25 * Cin * Cout
    bytes_accessed = (x2.size * cdt.itemsize + halo.size * cdt.itemsize
                      + (w0.size + wc1.size + wc2.size) * cdt.itemsize
                      + b2.size * 4
                      + N * H * 2 * W * 2 * Cout * odt.itemsize)
    ce = pl.CostEstimate(flops=flops, transcendentals=0,
                         bytes_accessed=int(bytes_accessed))

    # Output slab (N*H, 2, W, 2*Cout): row-major identical to NHWC (N,2H,2W,Cout).
    out = pl.pallas_call(
        kern,
        out_shape=jax.ShapeDtypeStruct((N * H, 2, W, 2 * Cout), odt),
        grid=(N * T,),
        in_specs=[
            pl.BlockSpec((TH, W, Cin), lambda i: (i, 0, 0)),
            pl.BlockSpec((2, W, Cin), lambda i: (i, 0, 0)),
            pl.BlockSpec((3 * Cin, 2 * Cout), lambda i: (0, 0)),
            pl.BlockSpec((3 * Cin, 4 * Cout), lambda i: (0, 0)),
            pl.BlockSpec((3 * Cin, 4 * Cout), lambda i: (0, 0)),
            pl.BlockSpec((1, 2 * Cout), lambda i: (0, 0)),
        ],
        out_specs=pl.BlockSpec((TH, 2, W, 2 * Cout), lambda i: (i, 0, 0, 0)),
        compiler_params=pltpu.CompilerParams(
            dimension_semantics=("parallel",),
            vmem_limit_bytes=vmem_limit,
        ),
        cost_estimate=ce,
    )(x2, halo, w0, wc1, wc2, b2)

    # Free metadata reshape: (N*H, 2, W, 2*Cout) == (N, 2H, 2W, Cout) in memory
    return out.reshape(N, 2 * H, 2 * W, Cout)


@functools.partial(jax.jit, static_argnames=("row_tile", "compute_dtype",
                                             "out_dtype", "non_linearity"))
def upscaling_layer_nhwc(x_nhwc, weight, bias=None, *, row_tile=None,
                         compute_dtype=jnp.bfloat16, out_dtype=None,
                         non_linearity="leaky_relu"):
    """Fast path: NHWC in, NHWC out, no layout transposes."""
    return _upscaling_nhwc_impl(x_nhwc, weight, bias, row_tile=row_tile,
                                compute_dtype=compute_dtype, out_dtype=out_dtype,
                                non_linearity=non_linearity)


@functools.partial(jax.jit, static_argnames=("row_tile", "compute_dtype",
                                             "out_dtype", "non_linearity"))
def upscaling_layer(x_nchw, weight, bias=None, *, row_tile=None,
                    compute_dtype=jnp.bfloat16, out_dtype=None,
                    non_linearity="leaky_relu"):
    """Module-compatible wrapper: NCHW in / NCHW out (extra relayouts; prefer
    upscaling_layer_nhwc inside NHWC models)."""
    x = jnp.transpose(x_nchw, (0, 2, 3, 1))
    y = _upscaling_nhwc_impl(x, weight, bias, row_tile=row_tile,
                             compute_dtype=compute_dtype, out_dtype=out_dtype,
                             non_linearity=non_linearity)
    return jnp.transpose(y, (0, 3, 1, 2))


# ---------------------------------------------------------------------------
# Pure-JAX reference (transposed conv via lhs-dilated conv), for sanity check
# ---------------------------------------------------------------------------
def upscaling_layer_ref(x_nchw, weight, bias, neg_slope=NEG_SLOPE):
    k = weight.shape[2]
    p = (1 + k) // 2 - 1                 # t_padding = int((outpad + k)/2 - 1)
    lo, hi = k - 1 - p, k - 1 - p + 1    # output_padding = 1 on the high side
    w_hwio = jnp.transpose(weight[:, :, ::-1, ::-1], (2, 3, 0, 1))
    x = jnp.transpose(x_nchw, (0, 2, 3, 1))
    y = jax.lax.conv_general_dilated(
        x, w_hwio, window_strides=(1, 1), padding=[(lo, hi), (lo, hi)],
        lhs_dilation=(2, 2), dimension_numbers=("NHWC", "HWIO", "NHWC"))
    y = y + bias
    y = jnp.where(y > 0, y, neg_slope * y)
    return jnp.transpose(y, (0, 3, 1, 2))


if __name__ == "__main__":
    # module defaults: in_ft = out_ft = 64, k_size = 5; small spatial test size
    N, Cin, Cout, H, W = 2, 64, 64, 16, 16
    key = jax.random.PRNGKey(0)
    kx, kw, kb = jax.random.split(key, 3)
    bound = 1.0 / np.sqrt(Cin * 5 * 5)
    x = jax.random.normal(kx, (N, Cin, H, W), jnp.float32)               # NCHW
    wt = jax.random.uniform(kw, (Cin, Cout, 5, 5), jnp.float32, -bound, bound)
    b = jax.random.uniform(kb, (Cout,), jnp.float32, -bound, bound)

    ref = np.asarray(upscaling_layer_ref(x, wt, b))

    # f32 compute, multi-row-tile path (exercises halo logic) -- tight check
    out_f32 = jax.block_until_ready(
        upscaling_layer(x, wt, b, row_tile=8, compute_dtype=jnp.float32))
    np.testing.assert_allclose(np.asarray(out_f32), ref, rtol=2e-3, atol=2e-3)

    # default path: bf16 storage + bf16 MXU compute, f32 accumulation, auto tile
    out_def = jax.block_until_ready(upscaling_layer(x, wt, b))
    np.testing.assert_allclose(np.asarray(out_def), ref, rtol=5e-2, atol=5e-2)

    # NHWC fast path (no wrapper relayouts), bf16 storage end-to-end
    x_nhwc = jnp.transpose(x, (0, 2, 3, 1)).astype(jnp.bfloat16)
    out_nhwc = jax.block_until_ready(
        upscaling_layer_nhwc(x_nhwc, wt, b, out_dtype=jnp.bfloat16))
    ref_nhwc = np.transpose(ref, (0, 2, 3, 1))
    np.testing.assert_allclose(np.asarray(out_nhwc, dtype=np.float32), ref_nhwc,
                               rtol=1e-1, atol=1e-1)

    print("KERNEL_OK")
</pallas_src>

<mosaic_0001>
module attributes {stable_mosaic.version = 11 : i64} {
  func.func @_upscale_kernel(%arg0: i32, %arg1: memref<8x16x64xf32, #tpu.memory_space<vmem>>, %arg2: memref<2x16x64xf32, #tpu.memory_space<vmem>>, %arg3: memref<192x128xf32, #tpu.memory_space<vmem>>, %arg4: memref<192x256xf32, #tpu.memory_space<vmem>>, %arg5: memref<192x256xf32, #tpu.memory_space<vmem>>, %arg6: memref<1x128xf32, #tpu.memory_space<vmem>>, %arg7: memref<8x2x16x128xf32, #tpu.memory_space<vmem>>) attributes {dimension_semantics = [#tpu.dimension_semantics<parallel>], iteration_bounds = array<i64: 4>, scalar_prefetch = 0 : i64, scratch_operands = 0 : i64, tpu.core_type = #tpu.core_type<tc>, window_params = [{transform_indices = @transform_0, window_bounds = array<i64: 8, 16, 64>}, {transform_indices = @transform_1, window_bounds = array<i64: 2, 16, 64>}, {pipeline_mode = #tpu.pipeline_mode<synchronous>, transform_indices = @transform_2, window_bounds = array<i64: 192, 128>}, {pipeline_mode = #tpu.pipeline_mode<synchronous>, transform_indices = @transform_3, window_bounds = array<i64: 192, 256>}, {pipeline_mode = #tpu.pipeline_mode<synchronous>, transform_indices = @transform_4, window_bounds = array<i64: 192, 256>}, {pipeline_mode = #tpu.pipeline_mode<synchronous>, transform_indices = @transform_5, window_bounds = array<i64: 1, 128>}, {transform_indices = @transform_6, window_bounds = array<i64: 8, 2, 16, 128>}]} {
    %c0 = arith.constant 0 : index
    %c0_0 = arith.constant 0 : index
    %c0_1 = arith.constant 0 : index
    %0 = vector.load %arg1[%c0, %c0_0, %c0_1] : memref<8x16x64xf32, #tpu.memory_space<vmem>>, vector<8x16x64xf32>
    %c0_2 = arith.constant 0 : index
    %c0_3 = arith.constant 0 : index
    %c0_4 = arith.constant 0 : index
    %1 = vector.load %arg2[%c0_2, %c0_3, %c0_4] : memref<2x16x64xf32, #tpu.memory_space<vmem>>, vector<1x16x64xf32>
    %2 = vector.shape_cast %1 : vector<1x16x64xf32> to vector<16x64xf32>
    %3 = vector.shape_cast %2 : vector<16x64xf32> to vector<1x16x64xf32>
    %c1 = arith.constant 1 : index
    %c0_5 = arith.constant 0 : index
    %c0_6 = arith.constant 0 : index
    %4 = vector.load %arg2[%c1, %c0_5, %c0_6] : memref<2x16x64xf32, #tpu.memory_space<vmem>>, vector<1x16x64xf32>
    %5 = vector.shape_cast %4 : vector<1x16x64xf32> to vector<16x64xf32>
    %6 = vector.shape_cast %5 : vector<16x64xf32> to vector<1x16x64xf32>
    %7 = tpu.concatenate %3, %0, %6 in 0 : vector<1x16x64xf32>, vector<8x16x64xf32>, vector<1x16x64xf32> -> vector<10x16x64xf32>
    %cst = arith.constant 0.000000e+00 : f32
    %8 = vector.broadcast %cst : f32 to vector<10x1x64xf32>
    %9 = vector.extract_strided_slice %7 {offsets = [0, 0, 0], sizes = [10, 15, 64], strides = [1, 1, 1]} : vector<10x16x64xf32> to vector<10x15x64xf32>
    %10 = tpu.concatenate %8, %9 in 1 : vector<10x1x64xf32>, vector<10x15x64xf32> -> vector<10x16x64xf32>
    %11 = vector.extract_strided_slice %7 {offsets = [0, 1, 0], sizes = [10, 15, 64], strides = [1, 1, 1]} : vector<10x16x64xf32> to vector<10x15x64xf32>
    %12 = tpu.concatenate %11, %8 in 1 : vector<10x15x64xf32>, vector<10x1x64xf32> -> vector<10x16x64xf32>
    %13 = tpu.concatenate %10, %7, %12 in 2 : vector<10x16x64xf32>, vector<10x16x64xf32>, vector<10x16x64xf32> -> vector<10x16x192xf32>
    %14 = vector.extract_strided_slice %13 {offsets = [0, 0, 0], sizes = [8, 16, 192], strides = [1, 1, 1]} : vector<10x16x192xf32> to vector<8x16x192xf32>
    %15 = vector.shape_cast %14 : vector<8x16x192xf32> to vector<128x192xf32>
    %16 = vector.extract_strided_slice %13 {offsets = [1, 0, 0], sizes = [8, 16, 192], strides = [1, 1, 1]} : vector<10x16x192xf32> to vector<8x16x192xf32>
    %17 = vector.shape_cast %16 : vector<8x16x192xf32> to vector<128x192xf32>
    %18 = vector.extract_strided_slice %13 {offsets = [2, 0, 0], sizes = [8, 16, 192], strides = [1, 1, 1]} : vector<10x16x192xf32> to vector<8x16x192xf32>
    %19 = vector.shape_cast %18 : vector<8x16x192xf32> to vector<128x192xf32>
    %c0_7 = arith.constant 0 : index
    %c0_8 = arith.constant 0 : index
    %20 = vector.load %arg4[%c0_7, %c0_8] : memref<192x256xf32, #tpu.memory_space<vmem>>, vector<192x256xf32>
    %cst_9 = arith.constant dense<0.000000e+00> : vector<128x256xf32>
    %21 = tpu.matmul %17, %20, %cst_9 {dimension_numbers = #tpu.dot_dimension_numbers<[1], [0], [0], [1], [0, 0, 1, 1], [], []>} : vector<128x192xf32>, vector<192x256xf32>, vector<128x256xf32> -> vector<128x256xf32>
    %c0_10 = arith.constant 0 : index
    %c0_11 = arith.constant 0 : index
    %22 = vector.load %arg5[%c0_10, %c0_11] : memref<192x256xf32, #tpu.memory_space<vmem>>, vector<192x256xf32>
    %cst_12 = arith.constant dense<0.000000e+00> : vector<128x256xf32>
    %23 = tpu.matmul %19, %22, %cst_12 {dimension_numbers = #tpu.dot_dimension_numbers<[1], [0], [0], [1], [0, 0, 1, 1], [], []>} : vector<128x192xf32>, vector<192x256xf32>, vector<128x256xf32> -> vector<128x256xf32>
    %24 = arith.addf %21, %23 : vector<128x256xf32>
    %25 = vector.extract_strided_slice %24 {offsets = [0, 0], sizes = [128, 128], strides = [1, 1]} : vector<128x256xf32> to vector<128x128xf32>
    %c0_13 = arith.constant 0 : index
    %c0_14 = arith.constant 0 : index
    %26 = vector.load %arg3[%c0_13, %c0_14] : memref<192x128xf32, #tpu.memory_space<vmem>>, vector<192x128xf32>
    %cst_15 = arith.constant dense<0.000000e+00> : vector<128x128xf32>
    %27 = tpu.matmul %15, %26, %cst_15 {dimension_numbers = #tpu.dot_dimension_numbers<[1], [0], [0], [1], [0, 0, 1, 1], [], []>} : vector<128x192xf32>, vector<192x128xf32>, vector<128x128xf32> -> vector<128x128xf32>
    %28 = arith.addf %25, %27 : vector<128x128xf32>
    %29 = vector.extract_strided_slice %24 {offsets = [0, 128], sizes = [128, 128], strides = [1, 1]} : vector<128x256xf32> to vector<128x128xf32>
    %c0_16 = arith.constant 0 : index
    %c0_17 = arith.constant 0 : index
    %30 = vector.load %arg6[%c0_16, %c0_17] : memref<1x128xf32, #tpu.memory_space<vmem>>, vector<1x128xf32>
    %31 = vector.broadcast %30 : vector<1x128xf32> to vector<128x128xf32>
    %32 = arith.addf %28, %31 : vector<128x128xf32>
    %33 = vector.broadcast %30 : vector<1x128xf32> to vector<128x128xf32>
    %34 = arith.addf %29, %33 : vector<128x128xf32>
    %cst_18 = arith.constant 0.000000e+00 : f32
    %35 = vector.broadcast %cst_18 : f32 to vector<128x128xf32>
    %36 = arith.cmpf ogt, %32, %35 : vector<128x128xf32>
    %cst_19 = arith.constant 0.00999999977 : f32
    %37 = vector.broadcast %cst_19 : f32 to vector<128x128xf32>
    %38 = arith.mulf %37, %32 : vector<128x128xf32>
    %39 = arith.select %36, %32, %38 : vector<128x128xi1>, vector<128x128xf32>
    %cst_20 = arith.constant 0.000000e+00 : f32
    %40 = vector.broadcast %cst_20 : f32 to vector<128x128xf32>
    %41 = arith.cmpf ogt, %34, %40 : vector<128x128xf32>
    %cst_21 = arith.constant 0.00999999977 : f32
    %42 = vector.broadcast %cst_21 : f32 to vector<128x128xf32>
    %43 = arith.mulf %42, %34 : vector<128x128xf32>
    %44 = arith.select %41, %34, %43 : vector<128x128xi1>, vector<128x128xf32>
    %45 = vector.shape_cast %39 : vector<128x128xf32> to vector<8x16x128xf32>
    %c0_22 = arith.constant 0 : index
    %c0_23 = arith.constant 0 : index
    %c0_24 = arith.constant 0 : index
    %c0_25 = arith.constant 0 : index
    %46 = vector.load %arg7[%c0_22, %c0_23, %c0_24, %c0_25] : memref<8x2x16x128xf32, #tpu.memory_space<vmem>>, vector<8x1x16x128xf32>
    %47 = vector.shape_cast %46 : vector<8x1x16x128xf32> to vector<8x16x128xf32>
    %48 = vector.shape_cast %45 : vector<8x16x128xf32> to vector<8x1x16x128xf32>
    tpu.vector_store %arg7[%c0_22, %c0_23, %c0_24, %c0_25], %48 {strides = array<i32>} : memref<8x2x16x128xf32, #tpu.memory_space<vmem>>, vector<8x1x16x128xf32>,
    %49 = vector.shape_cast %44 : vector<128x128xf32> to vector<8x16x128xf32>
    %c0_26 = arith.constant 0 : index
    %c1_27 = arith.constant 1 : index
    %c0_28 = arith.constant 0 : index
    %c0_29 = arith.constant 0 : index
    %50 = vector.load %arg7[%c0_26, %c1_27, %c0_28, %c0_29] : memref<8x2x16x128xf32, #tpu.memory_space<vmem>>, vector<8x1x16x128xf32>
    %51 = vector.shape_cast %50 : vector<8x1x16x128xf32> to vector<8x16x128xf32>
    %52 = vector.shape_cast %49 : vector<8x16x128xf32> to vector<8x1x16x128xf32>
    tpu.vector_store %arg7[%c0_26, %c1_27, %c0_28, %c0_29], %52 {strides = array<i32>} : memref<8x2x16x128xf32, #tpu.memory_space<vmem>>, vector<8x1x16x128xf32>,
    return
  }
  func.func @transform_0(%arg0: i32) -> (i32, i32, i32) {
    %c0_i32 = arith.constant 0 : i32
    %c0_i32_0 = arith.constant 0 : i32
    %c0_i32_1 = arith.constant 0 : i32
    return %arg0, %c0_i32, %c0_i32_0 : i32, i32, i32
  }
  func.func @transform_1(%arg0: i32) -> (i32, i32, i32) {
    %c0_i32 = arith.constant 0 : i32
    %c0_i32_0 = arith.constant 0 : i32
    %c0_i32_1 = arith.constant 0 : i32
    return %arg0, %c0_i32, %c0_i32_0 : i32, i32, i32
  }
  func.func @transform_2(%arg0: i32) -> (i32, i32) {
    %c0_i32 = arith.constant 0 : i32
    %c0_i32_0 = arith.constant 0 : i32
    %c0_i32_1 = arith.constant 0 : i32
    return %c0_i32, %c0_i32_0 : i32, i32
  }
  func.func @transform_3(%arg0: i32) -> (i32, i32) {
    %c0_i32 = arith.constant 0 : i32
    %c0_i32_0 = arith.constant 0 : i32
    %c0_i32_1 = arith.constant 0 : i32
    return %c0_i32, %c0_i32_0 : i32, i32
  }
  func.func @transform_4(%arg0: i32) -> (i32, i32) {
    %c0_i32 = arith.constant 0 : i32
    %c0_i32_0 = arith.constant 0 : i32
    %c0_i32_1 = arith.constant 0 : i32
    return %c0_i32, %c0_i32_0 : i32, i32
  }
  func.func @transform_5(%arg0: i32) -> (i32, i32) {
    %c0_i32 = arith.constant 0 : i32
    %c0_i32_0 = arith.constant 0 : i32
    %c0_i32_1 = arith.constant 0 : i32
    return %c0_i32, %c0_i32_0 : i32, i32
  }
  func.func @transform_6(%arg0: i32) -> (i32, i32, i32, i32) {
    %c0_i32 = arith.constant 0 : i32
    %c0_i32_0 = arith.constant 0 : i32
    %c0_i32_1 = arith.constant 0 : i32
    %c0_i32_2 = arith.constant 0 : i32
    return %arg0, %c0_i32, %c0_i32_0, %c0_i32_1 : i32, i32, i32, i32
  }
}

</mosaic_0001>

<bundles_post_ra>
// kernel: upscaling_layer.1
= control target key start
LH: loop header
LB: loop body
LE: loop exit
PB: predicated region body
PF: predicated region fallthrough
CT: control target
= control target key end

     0   :  { %s1777_s21 = smov 0   ;;  %s3047_s0 = inlined_call_operand.vmem [shape: f32[32,16,64], index: 0, kind: input, shape index: {}]   ;;  %s3048_s1 = inlined_call_operand.vmem [shape: f32[8,16,64], index: 1, kind: input, shape index: {}]   ;;  %s3049_s2 = inlined_call_operand.vmem [shape: f32[192,128], index: 2, kind: input, shape index: {}]   ;;  %s3050_s3 = inlined_call_operand.vmem [shape: f32[192,256], index: 3, kind: input, shape index: {}]   ;;  %s3051_s4 = inlined_call_operand.vmem [shape: f32[192,256], index: 4, kind: input, shape index: {}]   ;;  %s3052_s5 = inlined_call_operand.vmem [shape: f32[1,128], index: 5, kind: input, shape index: {}]   ;;  %s3053_s6 = inlined_call_operand.vmem [shape: f32[32,2,16,128], index: 6, kind: output, shape index: {}]  }
   0x1 LB: > { %s1590_s22 = sadd.s32 4294967295, %s1739_s21   ;;  %p1594_p0 = scmp.ge.s32.totalorder %s1739_s21, 1  ;;  %s1739_s21 = sphi %s1777_s21, %s16_s21  }
   0x2   : > { %p226_p1 = scmp.lt.s32.totalorder %s1739_s21, 5 }
   0x4   : > { %p227_p2 = pnand %p1594_p0, %p226_p1 }
   0x6   : > { %230 = sbr.rel (%p227_p2) target bundleno = 579 (0x243), region = 44 }
   0xb   : > { %s1595_s23 = sshll.u32 %s1590_s22, 3  ;;  %v1790_v0 = vld [vmem:[%s3051_s4 + $0x178] sm:$0xff]  ;;  %v1795_v1 = vld [vmem:[%s3051_s4 + $0x168] sm:$0xff]  ;;  %v1801_v2 = vld [vmem:[%s3051_s4 + $0x170] sm:$0xff]  ;;  %s1741_s25 = smov 64   ;;  %vm387_vm0 = vcmask 1046528  }
   0xc   : > { %p265_p3 = scmp.lt.s32.totalorder %s1595_s23, 31  ;;  %1715 = vmatpush.msra.mxu3 %v1790_v0  ;;  %v1806_v3 = vld [vmem:[%s3051_s4 + $0x160] sm:$0xff]  ;;  %v1811_v4 = vld [vmem:[%s3051_s4 + $0x158] sm:$0xff]  ;;  %1707 = vmatpush.msra.mxu1 %v1801_v2  ;;  %v1820_v5 = vld [vmem:[%s3051_s4 + $0x150] sm:$0xff]  ;;  %vm498_vm1 = vcmask 523264   ;;  %s1598_s12 = sshll.u32 %s1590_s22, 1 }
   0xd   : > { %v1825_v6 = vld [vmem:[%s3051_s4 + $0x148] sm:$0xff]  ;;  %v1838_v7 = vld [vmem:[%s3051_s4 + $0x138] sm:$0xff]  ;;  %v1844_v8 = vld [vmem:[%s3051_s4 + $0x140] sm:$0xff]  ;;  %p272_p4 = scmp.lt.s32.totalorder %s1598_s12, 7  ;;  %vm326_vm2 = vcmask 1040384  }
   0xe   : > { %s3114_s23 = smov (!%p265_p3, %s1595_s23), 31  ;;  %1716 = vmatpush.msra.mxu3 %v1795_v1  ;;  %1708 = vmatpush.msra.mxu1 %v1806_v3  ;;  %v1860_v11 = vld [vmem:[%s3051_s4 + $0x128] sm:$0xff]  ;;  %v1865_v12 = vld [vmem:[%s3051_s4 + $0x130] sm:$0xff]  ;;  %v1881_v16 = vld [vmem:[%s3051_s4 + $0x118] sm:$0xff] }
   0xf   : > { %s1704_s14 = sshll.u32 %s3114_s23, 4  ;;  %v1886_v17 = vld [vmem:[%s3051_s4 + $0x120] sm:$0xff]  ;;  %v1893_v18 = vld [vmem:[%s3051_s4 + $0x108] sm:$0xff]  ;;  %v1898_v19 = vld [vmem:[%s3051_s4 + $0x110] sm:$0xff]  ;;  %s3116_s12 = smov (!%p272_p4, %s1598_s12), 7 }
  0x10   : > { %1717 = vmatpush.msra.mxu3 %v1811_v4  ;;  %s1833_s17 = scalar_lea.vmem %s3047_s0, %s1704_s14  ;;  %1709 = vmatpush.msra.mxu1 %v1820_v5  ;;  %v597_v22 = vld [vmem:[%s3051_s4 + $0xf0] sm:$0xff]  ;;  %v1919_v24 = vld [vmem:[%s3051_s4 + $0x100] sm:$0xff]  ;;  %v598_v28 = vld [vmem:[%s3051_s4 + $0xf8] sm:$0xff]  ;;  %s1705_s26 = sshll.u32 %s3116_s12, 4 }
  0x11   : > { %v1847_v9 = vld [vmem:[%s1833_s17 + $0x20] sm:$0xff]  ;;  %v1850_v10 = vld [vmem:[%s1833_s17 + $0x10] sm:$0xff]  ;;  %v1868_v13 = vld [vmem:[%s1833_s17 + $0x48] sm:$0xff]  ;;  %655 = vmatpush.msra.mxu0 %v597_v22  ;;  %785 = vmatpush.msra.mxu2 %v598_v28  ;;  %s2107_s10 = scalar_lea.vmem %s3048_s1, %s1705_s26  ;;  %s1706_s27 = sshll.u32 %s3114_s23, 5 }
  0x12   : > { %1718 = vmatpush.msra.mxu3 %v1825_v6  ;;  %450 = vrot.lane.b32.xlu1 %v1847_v9, %s1741_s25  ;;  %v1871_v14 = vld [vmem:[%s1833_s17 + $0x30] sm:$0xff]  ;;  %v404_v15 = vrot.slane %v1868_v13, 1  ;;  %v1901_v20 = vld [vmem:[%s1833_s17 + $0x28] sm:$0xff]  ;;  %v1904_v21 = vld [vmem:[%s1833_s17 + $0x18] sm:$0xff]  ;;  %s2899_s30 = scalar_lea.vmem %s3053_s6, %s1706_s27 }
  0x13   : > { %446 = vrot.lane.b32.xlu0 %v1850_v10, %s1741_s25  ;;  %1710 = vmatpush.msra.mxu1 %v1844_v8  ;;  %v1922_v25 = vld [vmem:[%s1833_s17 + $0x38] sm:$0xff]  ;;  %v1927_v26 = vld [vmem:[%s1833_s17 + $0x50] sm:$0xff]  ;;  %v595_v29 = vld [vmem:[%s3051_s4 + $0xe0] sm:$0xff] }
  0x14   : > { %1719 = vmatpush.msra.mxu3 %v1838_v7  ;;  %454 = vrot.lane.b32.xlu2 %v1871_v14, %s1741_s25  ;;  %v1914_v23 = vsel %vm387_vm0, %v404_v15, 0.0  ;;  %v1930_v27 = vld [vmem:[%s1833_s17 + $0x58] sm:$0xff]  ;;  %v406_v30 = vrot.slane %v1927_v26, 1  ;;  %v596_v32 = vld [vmem:[%s3051_s4 + $0xe8] sm:$0xff]  ;;  %v593_v33 = vld [vmem:[%s3051_s4 + $0xd0] sm:$0xff] }
  0x15   : > { %1711 = vmatpush.msra.mxu1 %v1865_v12  ;;  %v407_v31 = vrot.slane %v1930_v27, 1  ;;  %656 = vmatpush.msra.mxu0 %v595_v29  ;;  %v594_v34 = vld [vmem:[%s3051_s4 + $0xd8] sm:$0xff]  ;;  %v591_v35 = vld [vmem:[%s3051_s4 + $0xc0] sm:$0xff]  ;;  %v592_v38 = vld [vmem:[%s3051_s4 + $0xc8] sm:$0xff] }
  0x16   : > { %1720 = vmatpush.msra.mxu3 %v1860_v11  ;;  %v1964_v36 = vld [vmem:[%s1833_s17 + $0x40] sm:$0xff]  ;;  %786 = vmatpush.msra.mxu2 %v596_v32  ;;  %v589_v40 = vld [vmem:[%s3051_s4 + $0xb0] sm:$0xff]  ;;  %v590_v41 = vld [vmem:[%s3051_s4 + $0xb8] sm:$0xff] }
  0x17   : > { %1712 = vmatpush.msra.mxu1 %v1886_v17  ;;  %657 = vmatpush.msra.mxu0 %v593_v33  ;;  %v1967_v37 = vsel %vm387_vm0, %v406_v30, %v407_v31  ;;  %v1973_v39 = vld [vmem:[%s1833_s17] sm:$0xff]  ;;  %v588_v43 = vld [vmem:[%s3051_s4 + $0xa8] sm:$0xff]  ;;  %v565_v44 = vld [vmem:[%s3050_s3 + $0x170] sm:$0xff]  ;;  %v2013_v49 = vsel %vm387_vm0, %v407_v31, 0.0 }
  0x18   : > { %1721 = vmatpush.msra.mxu3 %v1881_v16  ;;  %787 = vmatpush.msra.mxu2 %v594_v34  ;;  %v587_v42 = vld [vmem:[%s3051_s4 + $0xa0] sm:$0xff]  ;;  %v585_v45 = vld [vmem:[%s3051_s4 + $0x90] sm:$0xff]  ;;  %v586_v46 = vld [vmem:[%s3051_s4 + $0x98] sm:$0xff] }
  0x19   : > { %1713 = vmatpush.msra.mxu1 %v1898_v19  ;;  %658 = vmatpush.msra.mxu0 %v591_v35  ;;  %v549_v47 = vld [vmem:[%s3050_s3 + $0xf0] sm:$0xff]  ;;  %v2010_v48 = vld [vmem:[%s1833_s17 + $0x8] sm:$0xff]  ;;  %v583_v50 = vld [vmem:[%s3051_s4 + $0x80] sm:$0xff] }
  0x1a   : > { %1722 = vmatpush.msra.mxu3 %v1893_v18  ;;  %452 = vrot.lane.b32.xlu1 %v1901_v20, %s1741_s25  ;;  %v2021_v51 = vld [vmem:[%s1833_s17 + $0x60] sm:$0xff]  ;;  %v2024_v52 = vld [vmem:[%s1833_s17 + $0x68] sm:$0xff]  ;;  %v581_v54 = vld [vmem:[%s3051_s4 + $0x70] sm:$0xff] }
  0x1b   : > { %448 = vrot.lane.b32.xlu0 %v1904_v21, %s1741_s25  ;;  %1629 = vmatmul.msk.f32.vlgmr.msra.gmra.mxu3 %vm498_vm1, %v1914_v23  ;;  %v584_v53 = vld [vmem:[%s3051_s4 + $0x88] sm:$0xff]  ;;  %v547_v55 = vld [vmem:[%s3050_s3 + $0xe0] sm:$0xff]  ;;  %v409_v56 = vrot.slane %v2021_v51, 1  ;;  %v410_v57 = vrot.slane %v2024_v52, 1  ;;  %v582_v58 = vld [vmem:[%s3051_s4 + $0x78] sm:$0xff] }
  0x1c   : > { %1714 = vmatpush.msra.mxu1 %v1919_v24  ;;  %456 = vrot.lane.b32.xlu2 %v1922_v25, %s1741_s25  ;;  %v579_v59 = vld [vmem:[%s3051_s4 + $0x60] sm:$0xff]  ;;  %v545_v60 = vld [vmem:[%s3050_s3 + $0xd0] sm:$0xff]  ;;  %v580_v61 = vld [vmem:[%s3051_s4 + $0x68] sm:$0xff] }
  0x1d   : > { %1613 = vmatmul.msk.f32.vlgmr.msra.gmra.mxu1 %vm498_vm1, %v1914_v23  ;;  %788 = vmatpush.msra.mxu2 %v592_v38  ;;  %v577_v62 = vld [vmem:[%s3051_s4 + $0x50] sm:$0xff]  ;;  %v563_v63 = vld [vmem:[%s3050_s3 + $0x160] sm:$0xff]  ;;  %v2067_v22 = vsel %vm387_vm0, %v409_v56, %v410_v57  ;;  %v578_v28 = vld [vmem:[%s3051_s4 + $0x58] sm:$0xff] }
  0x1e   : > { %659 = vmatpush.msra.mxu0 %v589_v40  ;;  %993 = vmatpush.msrb.mxu3 %v565_v44  ;;  %v575_v29 = vld [vmem:[%s3051_s4 + $0x40] sm:$0xff]  ;;  %v576_v30 = vld [vmem:[%s3051_s4 + $0x48] sm:$0xff]  ;;  %v573_v32 = vld [vmem:[%s3051_s4 + $0x30] sm:$0xff] }
  0x1f   : > { %789 = vmatpush.msra.mxu2 %v590_v41  ;;  %920 = vmatpush.msrb.mxu1 %v549_v47  ;;  %v543_v31 = vld [vmem:[%s3050_s3 + $0xc0] sm:$0xff]  ;;  %v574_v33 = vld [vmem:[%s3051_s4 + $0x38] sm:$0xff]  ;;  %v541_v34 = vld [vmem:[%s3050_s3 + $0xb0] sm:$0xff] }
  0x20   : > { %660 = vmatpush.msra.mxu0 %v587_v42  ;;  %994 = vmatpush.msrb.mxu3 %v563_v63  ;;  %v2099_v35 = vld [vmem:[%s1833_s17 + $0x70] sm:$0xff]  ;;  %v571_v38 = vld [vmem:[%s3051_s4 + $0x20] sm:$0xff]  ;;  %v572_v40 = vld [vmem:[%s3051_s4 + $0x28] sm:$0xff]  ;;  %v2118_v42 = vsel %vm387_vm0, %v410_v57, 0.0 }
  0x21   : > { %790 = vmatpush.msra.mxu2 %v588_v43  ;;  %921 = vmatpush.msrb.mxu1 %v547_v55  ;;  %v539_v41 = vld [vmem:[%s3050_s3 + $0xa0] sm:$0xff]  ;;  %v569_v43 = vld [vmem:[%s3051_s4 + $0x10] sm:$0xff]  ;;  %v2124_v44 = vld [vmem:[%s1833_s17 + $0x78] sm:$0xff] }
  0x22   : > { %460 = vrot.lane.b32.xlu1 %v1868_v13, %s1741_s25  ;;  %661 = vmatpush.msra.mxu0 %v585_v45  ;;  %v2127_v45 = vld [vmem:[%s2107_s10 + $0x10] sm:$0xff]  ;;  %v568_v63 = vld [vmem:[%s3051_s4 + $0x8] sm:$0xff] }
  0x23   : > { %458 = vrot.lane.b32.xlu0 %v1964_v36, %s1741_s25  ;;  %1630 = vmatmul.msk.f32.gmra.mxu3 %vm498_vm1, %v1967_v37  ;;  %v537_v47 = vld [vmem:[%s3050_s3 + $0x90] sm:$0xff]  ;;  %v415_v57 = vrot.slane %v2127_v45, 1 }
  0x24   : > { %442 = vrot.lane.b32.xlu2 %v1973_v39, %s1741_s25  ;;  %791 = vmatpush.msra.mxu2 %v586_v46  ;;  %v570_v46 = vld [vmem:[%s3051_s4 + $0x18] sm:$0xff] }
  0x25   : > { %1614 = vmatmul.msk.f32.gmra.mxu1 %vm498_vm1, %v1967_v37  ;;  %662 = vmatpush.msra.mxu0 %v583_v50  ;;  %v412_v50 = vrot.slane %v2099_v35, 1 }
  0x26   : > { %792 = vmatpush.msra.mxu2 %v584_v53  ;;  %922 = vmatpush.msrb.mxu1 %v545_v60  ;;  %v413_v53 = vrot.slane %v2124_v44, 1  ;;  %v340_v60 = vrot.slane %v1922_v25, 7 }
  0x27   : > { %663 = vmatpush.msra.mxu0 %v581_v54  ;;  %v2146_v54 = vld [vmem:[%s2107_s10 + $0x18] sm:$0xff] }
  0x28   : > { %793 = vmatpush.msra.mxu2 %v582_v58  ;;  %923 = vmatpush.msrb.mxu1 %v543_v31  ;;  %v2151_v55 = vsel %vm387_vm0, %v412_v50, %v413_v53  ;;  %v2158_v56 = vsel %vm387_vm0, %v413_v53, 0.0  ;;  %v416_v58 = vrot.slane %v2146_v54, 1  ;;  %v559_v31 = vld [vmem:[%s3050_s3 + $0x140] sm:$0xff]  ;;  %v343_v50 = vrot.slane %v1868_v13, 7 }
  0x29   : > { %664 = vmatpush.msra.mxu0 %v579_v59  ;;  %3055 = vst [vmem:[#allocation2_spill] sm:$0xff] %v2158_v56  ;;  %v392_v53 = vrot.slane %v2010_v48, 1 }
  0x2a   : > { %444 = vrot.lane.b32.xlu1 %v2010_v48, %s1741_s25  ;;  %794 = vmatpush.msra.mxu2 %v580_v61  ;;  %v417_v59 = vsel %vm387_vm0, %v415_v57, %v416_v58  ;;  %v339_v61 = vrot.slane %v1871_v14, 7  ;;  %v391_v57 = vrot.slane %v1973_v39, 1 }
  0x2b   : > { %462 = vrot.lane.b32.xlu0 %v1927_v26, %s1741_s25  ;;  %1631 = vmatmul.msk.f32.gmra.mxu3 %vm498_vm1, %v2013_v49 }
  0x2c   : > { %464 = vrot.lane.b32.xlu2 %v1930_v27, %s1741_s25  ;;  %665 = vmatpush.msra.mxu0 %v577_v62  ;;  %v567_v62 = vld [vmem:[%s3051_s4] sm:$0xff] }
  0x2d   : > { %1615 = vmatmul.msk.f32.gmra.mxu1 %vm498_vm1, %v2013_v49  ;;  %795 = vmatpush.msra.mxu2 %v578_v28  ;;  %v535_v28 = vld [vmem:[%s3050_s3 + $0x80] sm:$0xff] }
  0x2e   : > { %666 = vmatpush.msra.mxu0 %v575_v29  ;;  %924 = vmatpush.msrb.mxu1 %v541_v34  ;;  %v561_v29 = vld [vmem:[%s3050_s3 + $0x150] sm:$0xff]  ;;  %v531_v34 = vld [vmem:[%s3050_s3 + $0x60] sm:$0xff] }
  0x2f   : > { %796 = vmatpush.msra.mxu2 %v576_v30  ;;  %995 = vmatpush.msrb.mxu3 %v561_v29  ;;  %v533_v30 = vld [vmem:[%s3050_s3 + $0x70] sm:$0xff] }
  0x30   : > { %667 = vmatpush.msra.mxu0 %v573_v32  ;;  %925 = vmatpush.msrb.mxu1 %v539_v41  ;;  %v437_v32 = vsel %vm387_vm0, %v416_v58, 0.0  ;;  %v334_v41 = vrot.slane %v1904_v21, 7  ;;  %v521_v29 = vld [vmem:[%s3050_s3 + $0x10] sm:$0xff] }
  0x31   : > { %797 = vmatpush.msra.mxu2 %v574_v33  ;;  %v2193_v33 = vsel %vm326_vm2, %v339_v61, %v340_v60  ;;  %996 = vmatpush.msrb.mxu3 %v559_v31  ;;  %v527_v60 = vld [vmem:[%s3050_s3 + $0x40] sm:$0xff] }
  0x32   : > { %468 = vrot.lane.b32.xlu1 %v2024_v52, %s1741_s25  ;;  %668 = vmatpush.msra.mxu0 %v571_v38  ;;  %v557_v38 = vld [vmem:[%s3050_s3 + $0x130] sm:$0xff] }
  0x33   : > { %466 = vrot.lane.b32.xlu0 %v2021_v51, %s1741_s25  ;;  %1632 = vmatmul.msk.f32.gmra.mxu3 %vm498_vm1, %v2067_v22 }
  0x34   : > { %470 = vrot.lane.b32.xlu2 %v2099_v35, %s1741_s25  ;;  %798 = vmatpush.msra.mxu2 %v572_v40  ;;  %v337_v40 = vrot.slane %v1901_v20, 7 }
  0x35   : > { %1616 = vmatmul.msk.f32.gmra.mxu1 %vm498_vm1, %v2067_v22  ;;  %669 = vmatpush.msra.mxu0 %v569_v43  ;;  %v336_v43 = vrot.slane %v1847_v9, 7 }
  0x36   : > { %799 = vmatpush.msra.mxu2 %v570_v46  ;;  %926 = vmatpush.msrb.mxu1 %v537_v47  ;;  %v555_v46 = vld [vmem:[%s3050_s3 + $0x120] sm:$0xff]  ;;  %v333_v47 = vrot.slane %v1850_v10, 7 }
  0x37   : > { %670 = vmatpush.msra.mxu0 %v567_v62  ;;  %997 = vmatpush.msrb.mxu3 %v557_v38  ;;  %v2224_v58 = vsel %vm326_vm2, %v336_v43, %v337_v40  ;;  %v525_v62 = vld [vmem:[%s3050_s3 + $0x30] sm:$0xff]  ;;  %v2309_v38 = vld [vmem:[%s2107_s10 + $0x8] sm:$0xff]  ;;  %v397_v40 = vrot.slane %v1847_v9, 1  ;;  %v1203_v9 = vld [vmem:[%s3049_s2 + $0xb8] sm:$0xff] }
  0x38   : > { %800 = vmatpush.msra.mxu2 %v568_v63  ;;  %927 = vmatpush.msrb.mxu1 %v535_v28  ;;  %v551_v63 = vld [vmem:[%s3050_s3 + $0x100] sm:$0xff]  ;;  %v2244_v28 = vsel %vm387_vm0, %v391_v57, %v392_v53 }
  0x39   : > { %728 = vmatpush.msrb.mxu0 %v1801_v2  ;;  %v342_v2 = vrot.slane %v1964_v36, 7  ;;  %998 = vmatpush.msrb.mxu3 %v555_v46 }
  0x3a   : > { %474 = vrot.lane.b32.xlu1 %v2127_v45, %s1741_s25  ;;  %858 = vmatpush.msrb.mxu2 %v1790_v0  ;;  %v529_v0 = vld [vmem:[%s3050_s3 + $0x50] sm:$0xff] }
  0x3b   : > { %472 = vrot.lane.b32.xlu0 %v2124_v44, %s1741_s25  ;;  %1633 = vmatmul.msk.f32.gmra.mxu3 %vm498_vm1, %v2118_v42 }
  0x3c   : > { %476 = vrot.lane.b32.xlu2 %v2146_v54, %s1741_s25  ;;  %928 = vmatpush.msrb.mxu1 %v533_v30 }
  0x3d   : > { %1617 = vmatmul.msk.f32.gmra.mxu1 %vm498_vm1, %v2118_v42  ;;  %859 = vmatpush.msrb.mxu2 %v1795_v1  ;;  %v553_v1 = vld [vmem:[%s3050_s3 + $0x110] sm:$0xff] }
  0x3e   : > { %929 = vmatpush.msrb.mxu1 %v531_v34  ;;  %729 = vmatpush.msrb.mxu0 %v1806_v3 }
  0x3f   : > { %860 = vmatpush.msrb.mxu2 %v1811_v4  ;;  %999 = vmatpush.msrb.mxu3 %v553_v1  ;;  %v2249_v4 = vsel %vm326_vm2, %v342_v2, %v343_v50 }
  0x40   : > { %930 = vmatpush.msrb.mxu1 %v529_v0  ;;  %730 = vmatpush.msrb.mxu0 %v1820_v5  ;;  %v523_v5 = vld [vmem:[%s3050_s3 + $0x20] sm:$0xff] }
  0x41   : > { %861 = vmatpush.msrb.mxu2 %v1825_v6  ;;  %1000 = vmatpush.msrb.mxu3 %v551_v63  ;;  %v519_v6 = vld [vmem:[%s3050_s3] sm:$0xff] }
  0x42   : > { %931 = vmatpush.msrb.mxu1 %v527_v60  ;;  %731 = vmatpush.msrb.mxu0 %v1844_v8  ;;  %v401_v60 = vrot.slane %v1922_v25, 1  ;;  %v1195_v25 = vld [vmem:[%s3049_s2 + $0x78] sm:$0xff] }
  0x43   : > { %1634 = vmatmul.msk.f32.gmra.mxu3 %vm498_vm1, %v2151_v55  ;;  %862 = vmatpush.msrb.mxu2 %v1838_v7  ;;  %v2272_v7 = vsel %vm387_vm0, %v392_v53, 0.0  ;;  %v380_v53 = vsel %vm326_vm2, 0.0, %v336_v43  ;;  %v400_v43 = vrot.slane %v1871_v14, 1  ;;  %v1194_v14 = vld [vmem:[%s3049_s2 + $0x70] sm:$0xff] }
  0x44   : > { %932 = vmatpush.msrb.mxu1 %v525_v62  ;;  %732 = vmatpush.msrb.mxu0 %v1865_v12  ;;  %v330_v12 = vrot.slane %v1973_v39, 7 }
  0x45   : > { %1618 = vmatmul.msk.f32.gmra.mxu1 %vm498_vm1, %v2151_v55  ;;  %863 = vmatpush.msrb.mxu2 %v1860_v11  ;;  %v331_v11 = vrot.slane %v2010_v48, 7 }
  0x46   : > { %933 = vmatpush.msrb.mxu1 %v523_v5  ;;  %733 = vmatpush.msrb.mxu0 %v1886_v17  ;;  %v395_v17 = vrot.slane %v1904_v21, 1  ;;  %v378_v30 = vsel %vm326_vm2, 0.0, %v330_v12  ;;  %v2356_v5 = vsel %vm387_vm0, %v400_v43, %v401_v60 }
  0x47   : > { %864 = vmatpush.msrb.mxu2 %v1881_v16  ;;  %v394_v16 = vrot.slane %v1850_v10, 1  ;;  %v379_v10 = vsel %vm326_vm2, 0.0, %v333_v47  ;;  %440 = vrot.lane.b32.xlu1 %v2309_v38, %s1741_s25 }
  0x48   : > { %934 = vmatpush.msrb.mxu1 %v521_v29  ;;  %734 = vmatpush.msrb.mxu0 %v1898_v19  ;;  %v332_v19 = vsel %vm326_vm2, %v330_v12, %v331_v11  ;;  %v2306_v34 = vsel %vm387_vm0, %v395_v17, 0.0  ;;  %v403_v11 = vrot.slane %v1964_v36, 1 }
  0x49   : > { %865 = vmatpush.msrb.mxu2 %v1893_v18  ;;  %v2289_v39 = vsel %vm387_vm0, %v394_v16, %v395_v17  ;;  %1282 = vmatpush.msra.mxu3 %v1203_v9  ;;  %v1193_v17 = vld [vmem:[%s3049_s2 + $0x68] sm:$0xff] }
  0x4a   : > { %935 = vmatpush.msrb.mxu1 %v519_v6  ;;  %735 = vmatpush.msrb.mxu0 %v1919_v24  ;;  %v2292_v24 = vld [vmem:[%s2107_s10] sm:$0xff]  ;;  %v2374_v6 = vsel %vm387_vm0, %v401_v60, 0.0  ;;  %v2398_v16 = vsel %vm387_vm0, %v403_v11, %v404_v15  ;;  %v348_v60 = vrot.slane %v2021_v51, 7  ;;  %v349_v11 = vrot.slane %v2024_v52, 7 }
  0x4b   : > { %1635 = vmatmul.msk.f32.gmra.mxu3 %vm498_vm1, %v2158_v56  ;;  %438 = vrot.lane.b32.xlu0 %v2292_v24, %s1741_s25  ;;  %v1192_v15 = vld [vmem:[%s3049_s2 + $0x60] sm:$0xff] }
  0x4c   : > { %1209 = vmatpush.msra.mxu1 %v1195_v25  ;;  %v1189_v25 = vld [vmem:[%s3049_s2 + $0x48] sm:$0xff] }
  0x4d   : > { %1619 = vmatmul.msk.f32.gmra.mxu1 %vm498_vm1, %v2158_v56 }
  0x4e   : > { %1210 = vmatpush.msra.mxu1 %v1194_v14  ;;  %v384_v14 = vsel %vm326_vm2, 0.0, %v348_v60 }
  0x50   : > { %1211 = vmatpush.msra.mxu1 %v1193_v17 }
  0x52   : > { %1212 = vmatpush.msra.mxu1 %v1192_v15  ;;  %v350_v15 = vsel %vm326_vm2, %v348_v60, %v349_v11  ;;  %v388_v11 = vrot.slane %v2292_v24, 1 }
  0x53   : > { %1636 = vmatmul.msk.f32.gmra.mxu3 %vm498_vm1, %v417_v59 }
  0x55   : > { %1620 = vmatmul.msk.f32.gmra.mxu1 %vm498_vm1, %v417_v59  ;;  %v335_v59 = vsel %vm326_vm2, %v333_v47, %v334_v41  ;;  %v398_v41 = vrot.slane %v1901_v20, 1 }
  0x57   : > { %v2323_v50 = vsel %vm387_vm0, %v397_v40, %v398_v41 }
  0x5b   : > { %1637 = vmatmul.msk.f32.gmra.mxu3 %vm498_vm1, %v437_v32 }
  0x5d   : > { %1621 = vmatmul.msk.f32.gmra.mxu1 %vm498_vm1, %v437_v32 }
  0x63   : > { %1638 = vmatmul.msk.f32.vlgmr.msrb.gmra.mxu3 %vm498_vm1, %v2244_v28 }
  0x6b   : > { %1639 = vmatmul.msk.f32.gmra.mxu3 %vm498_vm1, %v2272_v7 }
  0x6e   : > { %v2235_v3 = vpop.permute.xlu2 %454 }
  0x73   : > { %1640 = vmatmul.msk.f32.gmra.mxu3 %vm498_vm1, %v2289_v39 }
  0x76   : > { %v2269_v8 = vpop.permute.xlu2 %456 }
  0x77   : > { %v2390_v12 = vsel %vm498_vm1, %v2193_v33, %v2269_v8  ;;  %v382_v33 = vsel %vm326_vm2, 0.0, %v342_v2  ;;  %v1201_v2 = vld [vmem:[%s3049_s2 + $0xa8] sm:$0xff] }
  0x7b   : > { %1641 = vmatmul.msk.f32.gmra.mxu3 %vm498_vm1, %v2306_v34 }
  0x7e   : > { %v443_v31 = vpop.permute.xlu2 %442 }
  0x7f   : > { %v2286_v18 = vsel %vm498_vm1, %v378_v30, %v443_v31 }
  0x80   : > { %936 = vmatmul.f32.vlgmr.msrb.gmra.mxu1 %v2286_v18 }
  0x83   : > { %1642 = vmatmul.msk.f32.gmra.mxu3 %vm498_vm1, %v2323_v50 }
  0x84   : > { %v451_v21 = vpop.permute.xlu1 %450 }
  0x85   : > { %v447_v48 = vpop.permute.xlu0 %446  ;;  %v2331_v20 = vsel %vm498_vm1, %v380_v53, %v451_v21  ;;  %v1191_v21 = vld [vmem:[%s3049_s2 + $0x58] sm:$0xff] }
  0x86   : > { %v2301_v32 = vsel %vm498_vm1, %v379_v10, %v447_v48  ;;  %v345_v10 = vrot.slane %v1927_v26, 7  ;;  %1213 = vmatpush.msra.mxu1 %v1191_v21  ;;  %v465_v43 = vpop.permute.xlu2 %464  ;;  %v351_v21 = vrot.slane %v2099_v35, 7 }
  0x87   : > { %671 = vmatmul.f32.vlgmr.msra.gmra.mxu0 %v2301_v32  ;;  %801 = vmatmul.f32.vlgmr.msra.gmra.mxu2 %v2301_v32 }
  0x88   : > { %v383_v40 = vsel %vm326_vm2, 0.0, %v345_v10 }
  0x8c   : > { %v453_v0 = vpop.permute.xlu1 %452 }
  0x8d   : > { %v449_v46 = vpop.permute.xlu0 %448  ;;  %v2347_v1 = vsel %vm498_vm1, %v2224_v58, %v453_v0  ;;  %v381_v58 = vsel %vm326_vm2, 0.0, %v339_v61  ;;  %v346_v0 = vrot.slane %v1930_v27, 7 }
  0x8e   : > { %v2318_v47 = vsel %vm498_vm1, %v335_v59, %v449_v46  ;;  %v2336_v59 = vsel %vm387_vm0, %v398_v41, 0.0  ;;  %v2368_v29 = vsel %vm498_vm1, %v381_v58, %v2235_v3  ;;  %v1202_v3 = vld [vmem:[%s3049_s2 + $0xb0] sm:$0xff] }
  0x8f   : > { %674 = vmatmul.f32.gmra.mxu0 %v2318_v47  ;;  %804 = vmatmul.f32.gmra.mxu2 %v2318_v47  ;;  %v1190_v46 = vld [vmem:[%s3049_s2 + $0x50] sm:$0xff]  ;;  %v347_v9 = vsel %vm326_vm2, %v345_v10, %v346_v0  ;;  %v471_v0 = vpop.permute.xlu2 %470 }
  0x90   : > { %1643 = vmatmul.msk.f32.gmra.mxu3 %vm498_vm1, %v2336_v59  ;;  %1214 = vmatpush.msra.mxu1 %v1190_v46  ;;  %v2465_v27 = vsel %vm498_vm1, %v347_v9, %v465_v43  ;;  %v352_v9 = vrot.slane %v2124_v44, 7  ;;  %v566_v43 = vld [vmem:[%s3050_s3 + $0x178] sm:$0xff]  ;;  %v1186_v44 = vld [vmem:[%s3049_s2 + $0x30] sm:$0xff] }
  0x91   : > { %1283 = vmatpush.msra.mxu3 %v1202_v3  ;;  %1123 = vmatpush.msra.mxu2 %v566_v43  ;;  %v1183_v43 = vld [vmem:[%s3049_s2 + $0x18] sm:$0xff] }
  0x92   : > { %1215 = vmatpush.msra.mxu1 %v1189_v25  ;;  %v353_v60 = vsel %vm326_vm2, %v351_v21, %v352_v9  ;;  %v1184_v9 = vld [vmem:[%s3049_s2 + $0x20] sm:$0xff] }
  0x93   : > { %1284 = vmatpush.msra.mxu3 %v1201_v2 }
  0x94   : > { %v461_v57 = vpop.permute.xlu1 %460 }
  0x95   : > { %v459_v8 = vpop.permute.xlu0 %458  ;;  %v2430_v31 = vsel %vm498_vm1, %v2249_v4, %v461_v57  ;;  %v1200_v57 = vld [vmem:[%s3049_s2 + $0xa0] sm:$0xff] }
  0x96   : > { %v2411_v13 = vsel %vm498_vm1, %v382_v33, %v459_v8  ;;  %1285 = vmatpush.msra.mxu3 %v1200_v57  ;;  %v1188_v33 = vld [vmem:[%s3049_s2 + $0x40] sm:$0xff]  ;;  %v1199_v8 = vld [vmem:[%s3049_s2 + $0x98] sm:$0xff] }
  0x97   : > { %677 = vmatmul.f32.gmra.mxu0 %v2331_v20  ;;  %807 = vmatmul.f32.gmra.mxu2 %v2331_v20 }
  0x98   : > { %1644 = vmatmul.msk.f32.gmra.mxu3 %vm498_vm1, %v2356_v5  ;;  %1216 = vmatpush.msra.mxu1 %v1188_v33  ;;  %v389_v33 = vrot.slane %v2309_v38, 1 }
  0x99   : > { %1286 = vmatpush.msra.mxu3 %v1199_v8 }
  0x9c   : > { %v445_v62 = vpop.permute.xlu1 %444 }
  0x9d   : > { %v2350_v63 = vsel %vm498_vm1, %v332_v19, %v445_v62  ;;  %v2424_v19 = vpop.f32.mrf.mxu1  ;;  %v463_v41 = vpop.permute.xlu0 %462 }
  0x9e   : > { %939 = vmatmul.f32.gmra.mxu1 %v2350_v63  ;;  %v2379_v61 = vpop.f32.mrf.mxu3  ;;  %3059 = vst [vmem:[#allocation6_spill] sm:$0xff] %v2424_v19  ;;  %v2447_v4 = vsel %vm498_vm1, %v383_v40, %v463_v41  ;;  %v1187_v40 = vld [vmem:[%s3049_s2 + $0x38] sm:$0xff]  ;;  %v385_v41 = vsel %vm326_vm2, 0.0, %v351_v21  ;;  %v1198_v21 = vld [vmem:[%s3049_s2 + $0x90] sm:$0xff] }
  0x9f   : > { %680 = vmatmul.f32.gmra.mxu0 %v2347_v1  ;;  %810 = vmatmul.f32.gmra.mxu2 %v2347_v1  ;;  %3056 = vst [vmem:[#allocation3_spill] sm:$0xff] %v2379_v61  ;;  %v2517_v35 = vsel %vm498_vm1, %v385_v41, %v471_v0  ;;  %v354_v41 = vrot.slane %v2127_v45, 7  ;;  %v1197_v0 = vld [vmem:[%s3049_s2 + $0x88] sm:$0xff] }
  0xa0   : > { %1645 = vmatmul.msk.f32.gmra.mxu3 %vm498_vm1, %v2374_v6  ;;  %1217 = vmatpush.msra.mxu1 %v1187_v40  ;;  %v564_v40 = vld [vmem:[%s3050_s3 + $0x168] sm:$0xff] }
  0xa1   : > { %1287 = vmatpush.msra.mxu3 %v1198_v21  ;;  %1124 = vmatpush.msra.mxu2 %v564_v40  ;;  %v548_v45 = vld [vmem:[%s3050_s3 + $0xe8] sm:$0xff]  ;;  %v1182_v21 = vld [vmem:[%s3049_s2 + $0x10] sm:$0xff] }
  0xa2   : > { %1218 = vmatpush.msra.mxu1 %v1186_v44 }
  0xa3   : > { %1288 = vmatpush.msra.mxu3 %v1197_v0  ;;  %v544_v0 = vld [vmem:[%s3050_s3 + $0xc8] sm:$0xff] }
  0xa4   : > { %v469_v2 = vpop.permute.xlu1 %468 }
  0xa5   : > { %v2444_v26 = vpop.f32.mrf.mxu1  ;;  %v467_v3 = vpop.permute.xlu0 %466  ;;  %v2502_v10 = vsel %vm498_vm1, %v350_v15, %v469_v2  ;;  %v1185_v2 = vld [vmem:[%s3049_s2 + $0x28] sm:$0xff] }
  0xa6   : > { %942 = vmatmul.f32.gmra.mxu1 %v2301_v32  ;;  %v2403_v30 = vpop.f32.mrf.mxu3  ;;  %v2482_v51 = vsel %vm498_vm1, %v384_v14, %v467_v3  ;;  %v550_v14 = vld [vmem:[%s3050_s3 + $0xf8] sm:$0xff] }
  0xa7   : > { %683 = vmatmul.f32.gmra.mxu0 %v2368_v29  ;;  %813 = vmatmul.f32.gmra.mxu2 %v2368_v29  ;;  %3057 = vst [vmem:[#allocation4_spill] sm:$0xff] %v2403_v30 }
  0xa8   : > { %1646 = vmatmul.msk.f32.gmra.mxu3 %vm498_vm1, %v2398_v16  ;;  %1050 = vmatpush.msra.mxu0 %v550_v14  ;;  %v386_v14 = vsel %vm326_vm2, 0.0, %v354_v41 }
  0xa9   : > { %1219 = vmatpush.msra.mxu1 %v1185_v2  ;;  %v546_v2 = vld [vmem:[%s3050_s3 + $0xd8] sm:$0xff] }
  0xaa   : > { %1051 = vmatpush.msra.mxu0 %v548_v45  ;;  %v355_v45 = vrot.slane %v2146_v54, 7  ;;  %v542_v54 = vld [vmem:[%s3050_s3 + $0xb8] sm:$0xff] }
  0xab   : > { %1220 = vmatpush.msra.mxu1 %v1184_v9 }
  0xac   : > { %v475_v44 = vpop.permute.xlu1 %474  ;;  %1052 = vmatpush.msra.mxu0 %v546_v2  ;;  %v356_v2 = vsel %vm326_vm2, %v354_v41, %v355_v45  ;;  %v540_v41 = vld [vmem:[%s3050_s3 + $0xa8] sm:$0xff] }
  0xad   : > { %v2468_v62 = vpop.f32.mrf.mxu1  ;;  %v473_v25 = vpop.permute.xlu0 %472  ;;  %1221 = vmatpush.msra.mxu1 %v1183_v43  ;;  %v517_v40 = vsel %vm498_vm1, %v386_v14, %v475_v44  ;;  %v1181_v43 = vld [vmem:[%s3049_s2 + $0x8] sm:$0xff]  ;;  %v428_v44 = vsel %vm387_vm0, %v389_v33, 0.0 }
  0xae   : > { %945 = vmatmul.f32.gmra.mxu1 %v2318_v47  ;;  %v2419_v36 = vpop.f32.mrf.mxu3  ;;  %v2542_v8 = vsel %vm498_vm1, %v353_v60, %v473_v25  ;;  %v1196_v60 = vld [vmem:[%s3049_s2 + $0x80] sm:$0xff]  ;;  %v390_v25 = vsel %vm387_vm0, %v388_v11, %v389_v33  ;;  %v562_v11 = vld [vmem:[%s3050_s3 + $0x158] sm:$0xff]  ;;  %1053 = vmatpush.msra.mxu0 %v544_v0  ;;  %v477_v14 = vpop.permute.xlu2 %476  ;;  %v560_v33 = vld [vmem:[%s3050_s3 + $0x148] sm:$0xff] }
  0xaf   : > { %686 = vmatmul.f32.gmra.mxu0 %v2390_v12  ;;  %816 = vmatmul.f32.gmra.mxu2 %v2390_v12  ;;  %3058 = vst [vmem:[#allocation5_spill] sm:$0xff] %v2419_v36 }
  0xb0   : > { %1647 = vmatmul.msk.f32.gmra.mxu3 %vm498_vm1, %v1914_v23  ;;  %1222 = vmatpush.msra.mxu1 %v1182_v21  ;;  %v328_v21 = vrot.slane %v2309_v38, 7 }
  0xb1   : > { %1289 = vmatpush.msra.mxu3 %v1196_v60  ;;  %1125 = vmatpush.msra.mxu2 %v562_v11  ;;  %v518_v11 = vsel %vm498_vm1, %v356_v2, %v477_v14  ;;  %v534_v14 = vld [vmem:[%s3050_s3 + $0x78] sm:$0xff] }
  0xb2   : > { %1223 = vmatpush.msra.mxu1 %v1181_v43  ;;  %1054 = vmatpush.msra.mxu0 %v542_v54  ;;  %v558_v43 = vld [vmem:[%s3050_s3 + $0x138] sm:$0xff] }
  0xb3   : > { %1126 = vmatpush.msra.mxu2 %v560_v33  ;;  %v532_v33 = vld [vmem:[%s3050_s3 + $0x68] sm:$0xff] }
  0xb4   : > { %1055 = vmatpush.msra.mxu0 %v540_v41 }
  0xb5   : > { %v2487_v17 = vpop.f32.mrf.mxu1  ;;  %1127 = vmatpush.msra.mxu2 %v558_v43  ;;  %v530_v43 = vld [vmem:[%s3050_s3 + $0x58] sm:$0xff] }
  0xb6   : > { %948 = vmatmul.f32.gmra.mxu1 %v2331_v20  ;;  %v2439_v48 = vpop.f32.mrf.mxu3 }
  0xb7   : > { %689 = vmatmul.f32.gmra.mxu0 %v2411_v13  ;;  %819 = vmatmul.f32.gmra.mxu2 %v2411_v13  ;;  %3060 = vst [vmem:[#allocation7_spill] sm:$0xff] %v2439_v48 }
  0xb8   : > { %1648 = vmatmul.msk.f32.gmra.mxu3 %vm498_vm1, %v1967_v37 }
  0xbd   : > { %v2512_v46 = vpop.f32.mrf.mxu1 }
  0xbe   : > { %951 = vmatmul.f32.gmra.mxu1 %v2347_v1  ;;  %v2456_v53 = vpop.f32.mrf.mxu3 }
  0xbf   : > { %692 = vmatmul.f32.gmra.mxu0 %v2430_v31  ;;  %822 = vmatmul.f32.gmra.mxu2 %v2430_v31  ;;  %3061 = vst [vmem:[#allocation8_spill] sm:$0xff] %v2456_v53 }
  0xc0   : > { %1649 = vmatmul.msk.f32.gmra.mxu3 %vm498_vm1, %v2013_v49 }
  0xc5   : > { %v2537_v3 = vpop.f32.mrf.mxu1 }
  0xc6   : > { %954 = vmatmul.f32.gmra.mxu1 %v2368_v29  ;;  %v2476_v58 = vpop.f32.mrf.mxu3 }
  0xc7   : > { %695 = vmatmul.f32.gmra.mxu0 %v2447_v4  ;;  %825 = vmatmul.f32.gmra.mxu2 %v2447_v4  ;;  %3062 = vst [vmem:[#allocation9_spill] sm:$0xff] %v2476_v58 }
  0xc8   : > { %1650 = vmatmul.msk.f32.gmra.mxu3 %vm498_vm1, %v2067_v22 }
  0xcd   : > { %v2590_v9 = vpop.f32.mrf.mxu1 }
  0xce   : > { %957 = vmatmul.f32.gmra.mxu1 %v2390_v12  ;;  %v2499_v52 = vpop.f32.mrf.mxu3 }
  0xcf   : > { %698 = vmatmul.f32.gmra.mxu0 %v2465_v27  ;;  %828 = vmatmul.f32.gmra.mxu2 %v2465_v27  ;;  %3063 = vst [vmem:[#allocation10_spill] sm:$0xff] %v2499_v52 }
  0xd0   : > { %1651 = vmatmul.msk.f32.gmra.mxu3 %vm498_vm1, %v2118_v42 }
  0xd5   : > { %v2620_v45 = vpop.f32.mrf.mxu1 }
  0xd6   : > { %960 = vmatmul.f32.gmra.mxu1 %v2411_v13  ;;  %v2519_v57 = vpop.f32.mrf.mxu3 }
  0xd7   : > { %701 = vmatmul.f32.gmra.mxu0 %v2482_v51  ;;  %831 = vmatmul.f32.gmra.mxu2 %v2482_v51  ;;  %3064 = vst [vmem:[#allocation11_spill] sm:$0xff] %v2519_v57 }
  0xd8   : > { %1652 = vmatmul.msk.f32.gmra.mxu3 %vm498_vm1, %v2151_v55 }
  0xdd   : > { %v2646_v2 = vpop.f32.mrf.mxu1 }
  0xde   : > { %963 = vmatmul.f32.gmra.mxu1 %v2430_v31  ;;  %v2544_v15 = vpop.f32.mrf.mxu3 }
  0xdf   : > { %704 = vmatmul.f32.gmra.mxu0 %v2502_v10  ;;  %834 = vmatmul.f32.gmra.mxu2 %v2502_v10  ;;  %3065 = vst [vmem:[#allocation12_spill] sm:$0xff] %v2544_v15 }
  0xe0   : > { %1653 = vmatmul.msk.f32.gmra.mxu3 %vm498_vm1, %v2158_v56 }
  0xe6   : > { %966 = vmatmul.f32.gmra.mxu1 %v2447_v4  ;;  %v2593_v60 = vpop.f32.mrf.mxu3 }
  0xe7   : > { %707 = vmatmul.f32.gmra.mxu0 %v2517_v35  ;;  %837 = vmatmul.f32.gmra.mxu2 %v2517_v35 }
  0xe8   : > { %1670 = vmatmul.msk.f32.vlgmr.msra.gmra.mxu3 %vm498_vm1, %v390_v25  ;;  %v1180_v25 = vld [vmem:[%s3049_s2] sm:$0xff] }
  0xe9   : > { %1224 = vmatpush.msra.mxu1 %v1180_v25 }
  0xee   : > { %969 = vmatmul.f32.gmra.mxu1 %v2465_v27  ;;  %v2611_v0 = vpop.f32.mrf.mxu3 }
  0xef   : > { %710 = vmatmul.f32.gmra.mxu0 %v2542_v8  ;;  %840 = vmatmul.f32.gmra.mxu2 %v2542_v8 }
  0xf0   : > { %1671 = vmatmul.msk.f32.gmra.mxu3 %vm498_vm1, %v428_v44  ;;  %v536_v44 = vld [vmem:[%s3050_s3 + $0x88] sm:$0xff] }
  0xf6   : > { %972 = vmatmul.f32.gmra.mxu1 %v2482_v51  ;;  %v2633_v54 = vpop.f32.mrf.mxu3 }
  0xf7   : > { %713 = vmatmul.f32.gmra.mxu0 %v517_v40  ;;  %843 = vmatmul.f32.gmra.mxu2 %v517_v40  ;;  %v327_v40 = vrot.slane %v2292_v24, 7  ;;  %v538_v24 = vld [vmem:[%s3050_s3 + $0x98] sm:$0xff] }
  0xf8   : > { %1056 = vmatpush.msra.mxu0 %v538_v24  ;;  %1672 = vmatmul.msk.f32.gmra.mxu3 %vm498_vm1, %v2244_v28 }
  0xf9   : > { %v329_v38 = vsel %vm326_vm2, %v327_v40, %v328_v21 }
  0xfa   : > { %1057 = vmatpush.msra.mxu0 %v536_v44  ;;  %v554_v44 = vld [vmem:[%s3050_s3 + $0x118] sm:$0xff] }
  0xfc   : > { %1058 = vmatpush.msra.mxu0 %v534_v14 }
  0xfd   : > { %v2679_v15 = vpop.f32.mrf.mxu1 }
  0xfe   : > { %975 = vmatmul.f32.gmra.mxu1 %v2502_v10  ;;  %1059 = vmatpush.msra.mxu0 %v532_v33  ;;  %v2660_v24 = vpop.f32.mrf.mxu3  ;;  %v439_v33 = vpop.permute.xlu0 %438 }
  0xff   : > { %716 = vmatmul.f32.gmra.mxu0 %v518_v11  ;;  %846 = vmatmul.f32.gmra.mxu2 %v518_v11  ;;  %v556_v11 = vld [vmem:[%s3050_s3 + $0x128] sm:$0xff] }
 0x100   : > { %1673 = vmatmul.msk.f32.gmra.mxu3 %vm498_vm1, %v2272_v7  ;;  %1128 = vmatpush.msra.mxu2 %v556_v11  ;;  %v377_v11 = vsel %vm326_vm2, 0.0, %v327_v40  ;;  %v526_v40 = vld [vmem:[%s3050_s3 + $0x38] sm:$0xff] }
 0x101   : > { %1060 = vmatpush.msra.mxu0 %v530_v43  ;;  %v528_v43 = vld [vmem:[%s3050_s3 + $0x48] sm:$0xff]  ;;  %v499_v52 = vsel %vm498_vm1, %v377_v11, %v439_v33 }
 0x102   : > { %1129 = vmatpush.msra.mxu2 %v554_v44  ;;  %v524_v11 = vld [vmem:[%s3050_s3 + $0x28] sm:$0xff] }
 0x103   : > { %1061 = vmatpush.msra.mxu0 %v528_v43  ;;  %v552_v43 = vld [vmem:[%s3050_s3 + $0x108] sm:$0xff] }
 0x104   : > { %v2631_v25 = vpop.f32.mrf.mxu0  ;;  %1130 = vmatpush.msra.mxu2 %v552_v43  ;;  %v520_v43 = vld [vmem:[%s3050_s3 + $0x8] sm:$0xff] }
 0x105   : > { %1062 = vmatpush.msra.mxu0 %v526_v40  ;;  %v441_v40 = vpop.permute.xlu1 %440 }
 0x106   : > { %978 = vmatmul.f32.gmra.mxu1 %v2517_v35  ;;  %v2686_v44 = vpop.f32.mrf.mxu3  ;;  %v500_v48 = vsel %vm498_vm1, %v329_v38, %v441_v40 }
 0x107   : > { %1606 = vmatmul.msk.f32.vlgmr.msrb.gmra.mxu0 %vm498_vm1, %v2289_v39  ;;  %1622 = vmatmul.msk.f32.vlgmr.msrb.gmra.mxu2 %vm498_vm1, %v2289_v39 }
 0x108   : > { %1674 = vmatmul.msk.f32.gmra.mxu3 %vm498_vm1, %v2289_v39  ;;  %1063 = vmatpush.msra.mxu0 %v524_v11 }
 0x10a   : > { %v2648_v21 = vpop.f32.mrf.mxu2 }
 0x10b   : > { %3066 = vst [vmem:[#allocation13_spill] sm:$0xff] %v2648_v21 }
 0x10c   : > { %v2658_v41 = vpop.f32.mrf.mxu0 }
 0x10e   : > { %981 = vmatmul.f32.gmra.mxu1 %v2542_v8 }
 0x10f   : > { %1607 = vmatmul.msk.f32.gmra.mxu0 %vm498_vm1, %v2306_v34  ;;  %1623 = vmatmul.msk.f32.gmra.mxu2 %vm498_vm1, %v2306_v34 }
 0x110   : > { %1675 = vmatmul.msk.f32.gmra.mxu3 %vm498_vm1, %v2306_v34 }
 0x112   : > { %v2673_v14 = vpop.f32.mrf.mxu2 }
 0x113   : > { %3067 = vst [vmem:[#allocation14_spill] sm:$0xff] %v2673_v14  ;;  %v2713_v36 = vpop.f32.mrf.mxu3 }
 0x114   : > { %v2683_v57 = vpop.f32.mrf.mxu0  ;;  %3069 = vst [vmem:[#allocation16_spill] sm:$0xff] %v2713_v36 }
 0x116   : > { %1225 = vmatmul.f32.vlgmr.msra.gmra.mxu1 %v499_v52  ;;  %v522_v52 = vld [vmem:[%s3050_s3 + $0x18] sm:$0xff] }
 0x117   : > { %1608 = vmatmul.msk.f32.gmra.mxu0 %vm498_vm1, %v2323_v50  ;;  %1624 = vmatmul.msk.f32.gmra.mxu2 %vm498_vm1, %v2323_v50 }
 0x118   : > { %1064 = vmatpush.msra.mxu0 %v522_v52  ;;  %1676 = vmatmul.msk.f32.gmra.mxu3 %vm498_vm1, %v2323_v50 }
 0x11a   : > { %v2701_v33 = vpop.f32.mrf.mxu2  ;;  %1065 = vmatpush.msra.mxu0 %v520_v43 }
 0x11b   : > { %3068 = vst [vmem:[#allocation15_spill] sm:$0xff] %v2701_v33  ;;  %v2710_v53 = vpop.f32.mrf.mxu1  ;;  %v2730_v52 = vpop.f32.mrf.mxu3 }
 0x11c   : > { %v2705_v58 = vpop.f32.mrf.mxu0  ;;  %3071 = vst [vmem:[#allocation18_spill] sm:$0xff] %v2730_v52 }
 0x11e   : > { %1228 = vmatmul.f32.gmra.mxu1 %v500_v48 }
 0x11f   : > { %1609 = vmatmul.msk.f32.gmra.mxu0 %vm498_vm1, %v2336_v59  ;;  %1625 = vmatmul.msk.f32.gmra.mxu2 %vm498_vm1, %v2336_v59 }
 0x120   : > { %1677 = vmatmul.msk.f32.gmra.mxu3 %vm498_vm1, %v2336_v59 }
 0x122   : > { %v2722_v11 = vpop.f32.mrf.mxu2 }
 0x123   : > { %3070 = vst [vmem:[#allocation17_spill] sm:$0xff] %v2722_v11  ;;  %v2728_v40 = vpop.f32.mrf.mxu1  ;;  %v2745_v61 = vpop.f32.mrf.mxu3 }
 0x124   : > { %v2726_v38 = vpop.f32.mrf.mxu0  ;;  %3073 = vst [vmem:[#allocation20_spill] sm:$0xff] %v2745_v61 }
 0x126   : > { %1231 = vmatmul.f32.gmra.mxu1 %v2286_v18 }
 0x127   : > { %1610 = vmatmul.msk.f32.gmra.mxu0 %vm498_vm1, %v2356_v5  ;;  %1626 = vmatmul.msk.f32.gmra.mxu2 %vm498_vm1, %v2356_v5 }
 0x128   : > { %1678 = vmatmul.msk.f32.gmra.mxu3 %vm498_vm1, %v2356_v5 }
 0x12a   : > { %v2737_v48 = vpop.f32.mrf.mxu2 }
 0x12b   : > { %3072 = vst [vmem:[#allocation19_spill] sm:$0xff] %v2737_v48  ;;  %v2743_v30 = vpop.f32.mrf.mxu1  ;;  %v1026_v19 = vpop.f32.mrf.mxu3 }
 0x12c   : > { %v2741_v43 = vpop.f32.mrf.mxu0 }
 0x12e   : > { %1234 = vmatmul.f32.gmra.mxu1 %v2350_v63 }
 0x12f   : > { %1611 = vmatmul.msk.f32.gmra.mxu0 %vm498_vm1, %v2374_v6  ;;  %1627 = vmatmul.msk.f32.gmra.mxu2 %vm498_vm1, %v2374_v6 }
 0x130   : > { %1679 = vmatmul.msk.f32.gmra.mxu3 %vm498_vm1, %v2374_v6 }
 0x132   : > { %v2752_v11 = vpop.f32.mrf.mxu2 }
 0x133   : > { %3074 = vst [vmem:[#allocation21_spill] sm:$0xff] %v2752_v11  ;;  %v2758_v33 = vpop.f32.mrf.mxu1  ;;  %v1029_v52 = vpop.f32.mrf.mxu3 }
 0x134   : > { %v2756_v48 = vpop.f32.mrf.mxu0 }
 0x135   : > { %3075 = vst [vmem:[#allocation22_spill] sm:$0xff] %v2756_v48 }
 0x136   : > { %1237 = vmatmul.f32.gmra.mxu1 %v2301_v32 }
 0x137   : > { %1612 = vmatmul.msk.f32.gmra.mxu0 %vm498_vm1, %v2398_v16  ;;  %1628 = vmatmul.msk.f32.gmra.mxu2 %vm498_vm1, %v2398_v16 }
 0x138   : > { %1680 = vmatmul.msk.f32.gmra.mxu3 %vm498_vm1, %v2398_v16 }
 0x13a   : > { %v2765_v61 = vpop.f32.mrf.mxu2 }
 0x13b   : > { %3076 = vst [vmem:[#allocation23_spill] sm:$0xff] %v2765_v61  ;;  %v2771_v14 = vpop.f32.mrf.mxu1  ;;  %v1032_v48 = vpop.f32.mrf.mxu3 }
 0x13c   : > { %v2769_v11 = vpop.f32.mrf.mxu0  ;;  %3078 = vst [vmem:[#allocation25_spill] sm:$0xff] %v2771_v14 }
 0x13d   : > { %3077 = vst [vmem:[#allocation24_spill] sm:$0xff] %v2769_v11 }
 0x13e   : > { %1240 = vmatmul.f32.gmra.mxu1 %v2318_v47 }
 0x13f   : > { %1066 = vmatmul.f32.vlgmr.msra.gmra.mxu0 %v2286_v18  ;;  %1654 = vmatmul.msk.f32.vlgmr.msra.gmra.mxu2 %vm498_vm1, %v2244_v28 }
 0x140   : > { %1681 = vmatmul.msk.f32.gmra.mxu3 %vm498_vm1, %v1914_v23 }
 0x142   : > { %v2777_v21 = vpop.f32.mrf.mxu2 }
 0x143   : > { %3079 = vst [vmem:[#allocation26_spill] sm:$0xff] %v2777_v21  ;;  %v2781_v36 = vpop.f32.mrf.mxu1  ;;  %v1035_v11 = vpop.f32.mrf.mxu3 }
 0x144   : > { %v696_v61 = vpop.f32.mrf.mxu0  ;;  %3080 = vst [vmem:[#allocation27_spill] sm:$0xff] %v2781_v36 }
 0x146   : > { %1243 = vmatmul.f32.gmra.mxu1 %v2331_v20 }
 0x147   : > { %1069 = vmatmul.f32.gmra.mxu0 %v2350_v63  ;;  %1655 = vmatmul.msk.f32.gmra.mxu2 %vm498_vm1, %v2272_v7  ;;  %v762_v7 = vadd.f32 %v2444_v26, %v696_v61 }
 0x148   : > { %1682 = vmatmul.msk.f32.gmra.mxu3 %vm498_vm1, %v1967_v37 }
 0x14a   : > { %v2787_v18 = vpop.f32.mrf.mxu2 }
 0x14b   : > { %3081 = vst [vmem:[#allocation28_spill] sm:$0xff] %v2787_v18  ;;  %v2791_v21 = vpop.f32.mrf.mxu1  ;;  %v1038_v14 = vpop.f32.mrf.mxu3 }
 0x14c   : > { %v699_v28 = vpop.f32.mrf.mxu0  ;;  %3082 = vst [vmem:[#allocation29_spill] sm:$0xff] %v2791_v21 }
 0x14d   : > { %v765_v61 = vadd.f32 %v2468_v62, %v699_v28 }
 0x14e   : > { %1246 = vmatmul.f32.gmra.mxu1 %v2347_v1 }
 0x14f   : > { %1072 = vmatmul.f32.gmra.mxu0 %v2301_v32  ;;  %1656 = vmatmul.msk.f32.gmra.mxu2 %vm498_vm1, %v2289_v39 }
 0x150   : > { %1683 = vmatmul.msk.f32.gmra.mxu3 %vm498_vm1, %v2013_v49 }
 0x152   : > { %v2797_v63 = vpop.f32.mrf.mxu2 }
 0x153   : > { %3083 = vst [vmem:[#allocation30_spill] sm:$0xff] %v2797_v63  ;;  %v961_v36 = vpop.f32.mrf.mxu1  ;;  %v1041_v21 = vpop.f32.mrf.mxu3 }
 0x154   : > { %v702_v18 = vpop.f32.mrf.mxu0  ;;  %v962_v56 = vadd.f32 %v961_v36, %v762_v7 }
 0x156   : > { %v2805_v32 = vadd.f32 %v1026_v19, %v962_v56  ;;  %1249 = vmatmul.f32.gmra.mxu1 %v2368_v29 }
 0x157   : > { %1075 = vmatmul.f32.gmra.mxu0 %v2318_v47  ;;  %1657 = vmatmul.msk.f32.gmra.mxu2 %vm498_vm1, %v2306_v34  ;;  %v768_v47 = vadd.f32 %v2487_v17, %v702_v18 }
 0x158   : > { %1684 = vmatmul.msk.f32.gmra.mxu3 %vm498_vm1, %v2067_v22 }
 0x15a   : > { %v2808_v39 = vpop.f32.mrf.mxu2 }
 0x15b   : > { %v964_v63 = vpop.f32.mrf.mxu1  ;;  %v1044_v28 = vpop.f32.mrf.mxu3 }
 0x15c   : > { %v705_v26 = vpop.f32.mrf.mxu0  ;;  %v965_v36 = vadd.f32 %v964_v63, %v765_v61 }
 0x15d   : > { %v771_v17 = vadd.f32 %v2512_v46, %v705_v26 }
 0x15e   : > { %v2816_v56 = vadd.f32 %v1029_v52, %v965_v36  ;;  %1252 = vmatmul.f32.gmra.mxu1 %v2390_v12 }
 0x15f   : > { %1078 = vmatmul.f32.gmra.mxu0 %v2331_v20  ;;  %1658 = vmatmul.msk.f32.gmra.mxu2 %vm498_vm1, %v2323_v50 }
 0x160   : > { %1685 = vmatmul.msk.f32.gmra.mxu3 %vm498_vm1, %v2118_v42 }
 0x162   : > { %v2819_v34 = vpop.f32.mrf.mxu2 }
 0x163   : > { %v967_v62 = vpop.f32.mrf.mxu1  ;;  %v1047_v7 = vpop.f32.mrf.mxu3 }
 0x164   : > { %v708_v19 = vpop.f32.mrf.mxu0  ;;  %v968_v63 = vadd.f32 %v967_v62, %v768_v47 }
 0x166   : > { %v2827_v50 = vadd.f32 %v1032_v48, %v968_v63  ;;  %1255 = vmatmul.f32.gmra.mxu1 %v2411_v13  ;;  %v774_v48 = vadd.f32 %v2537_v3, %v708_v19 }
 0x167   : > { %1081 = vmatmul.f32.gmra.mxu0 %v2347_v1  ;;  %1659 = vmatmul.msk.f32.gmra.mxu2 %vm498_vm1, %v2336_v59 }
 0x16a   : > { %v2830_v20 = vpop.f32.mrf.mxu2 }
 0x16b   : > { %v970_v18 = vpop.f32.mrf.mxu1  ;;  %v1291_v26 = vpop.f32.mrf.mxu3 }
 0x16c   : > { %v711_v52 = vpop.f32.mrf.mxu0  ;;  %v971_v61 = vadd.f32 %v970_v18, %v771_v17 }
 0x16e   : > { %v2838_v59 = vadd.f32 %v1035_v11, %v971_v61  ;;  %1258 = vmatmul.f32.gmra.mxu1 %v2430_v31  ;;  %v777_v11 = vadd.f32 %v2590_v9, %v711_v52 }
 0x16f   : > { %1084 = vmatmul.f32.gmra.mxu0 %v2368_v29  ;;  %1660 = vmatmul.msk.f32.gmra.mxu2 %vm498_vm1, %v2356_v5 }
 0x172   : > { %v2841_v1 = vpop.f32.mrf.mxu2 }
 0x173   : > { %v973_v47 = vpop.f32.mrf.mxu1 }
 0x174   : > { %v714_v36 = vpop.f32.mrf.mxu0  ;;  %v974_v46 = vadd.f32 %v973_v47, %v774_v48 }
 0x176   : > { %v2847_v29 = vadd.f32 %v1038_v14, %v974_v46  ;;  %1261 = vmatmul.f32.gmra.mxu1 %v2447_v4  ;;  %v780_v14 = vadd.f32 %v2620_v45, %v714_v36 }
 0x177   : > { %1087 = vmatmul.f32.gmra.mxu0 %v2390_v12  ;;  %1661 = vmatmul.msk.f32.gmra.mxu2 %vm498_vm1, %v2374_v6  ;;  %v1294_v12 = vpop.f32.mrf.mxu3 }
 0x17a   : > { %v2850_v5 = vpop.f32.mrf.mxu2 }
 0x17b   : > { %v976_v63 = vpop.f32.mrf.mxu1 }
 0x17c   : > { %v717_v62 = vpop.f32.mrf.mxu0  ;;  %v977_v3 = vadd.f32 %v976_v63, %v777_v11 }
 0x17d   : > { %v783_v52 = vadd.f32 %v2646_v2, %v717_v62 }
 0x17e   : > { %v2856_v19 = vadd.f32 %v1041_v21, %v977_v3  ;;  %1264 = vmatmul.f32.gmra.mxu1 %v2465_v27 }
 0x17f   : > { %1090 = vmatmul.f32.gmra.mxu0 %v2411_v13  ;;  %1662 = vmatmul.msk.f32.gmra.mxu2 %vm498_vm1, %v2398_v16  ;;  %v1297_v16 = vpop.f32.mrf.mxu3 }
 0x182   : > { %v2859_v6 = vpop.f32.mrf.mxu2 }
 0x183   : > { %v979_v18 = vpop.f32.mrf.mxu1 }
 0x184   : > { %v737_v17 = vpop.f32.mrf.mxu0  ;;  %v980_v9 = vadd.f32 %v979_v18, %v780_v14 }
 0x185   : > { %v738_v45 = vadd.f32 %v737_v17, %v2631_v25 }
 0x186   : > { %v2865_v13 = vadd.f32 %v1044_v28, %v980_v9  ;;  %1267 = vmatmul.f32.gmra.mxu1 %v2482_v51 }
 0x187   : > { %1093 = vmatmul.f32.gmra.mxu0 %v2430_v31  ;;  %1663 = vmatmul.msk.f32.gmra.mxu2 %vm498_vm1, %v1914_v23  ;;  %v938_v31 = vadd.f32 %v2679_v15, %v738_v45  ;;  %v1300_v2 = vpop.f32.mrf.mxu3 }
 0x189   : > { %v1003_v11 = vadd.f32 %v2593_v60, %v938_v31 }
 0x18a   : > { %v2868_v21 = vpop.f32.mrf.mxu2 }
 0x18b   : > { %v982_v48 = vpop.f32.mrf.mxu1 }
 0x18c   : > { %v740_v61 = vpop.f32.mrf.mxu0  ;;  %v983_v36 = vadd.f32 %v982_v48, %v783_v52 }
 0x18d   : > { %v741_v25 = vadd.f32 %v740_v61, %v2658_v41 }
 0x18e   : > { %v2875_v23 = vadd.f32 %v1047_v7, %v983_v36  ;;  %1270 = vmatmul.f32.gmra.mxu1 %v2502_v10 }
 0x18f   : > { %1096 = vmatmul.f32.gmra.mxu0 %v2447_v4  ;;  %1664 = vmatmul.msk.f32.gmra.mxu2 %vm498_vm1, %v1967_v37  ;;  %v2886_v37 = vld [vmem:[%s3052_s5] ss:$0 sm:$0xff]  ;;  %v941_v7 = vadd.f32 %v2710_v53, %v741_v25  ;;  %v1303_v63 = vpop.f32.mrf.mxu3 }
 0x191   : > { %v1006_v53 = vadd.f32 %v2611_v0, %v941_v7 }
 0x192   : > { %v2879_v28 = vpop.f32.mrf.mxu2 }
 0x193   : > { %v1226_v46 = vpop.f32.mrf.mxu1 }
 0x194   : > { %v743_v47 = vpop.f32.mrf.mxu0  ;;  %v1292_v4 = vadd.f32 %v1291_v26, %v1226_v46 }
 0x196   : > { %v1339_v15 = vadd.f32 %v1292_v4, %v1003_v11 }
 0x197   : > { %1099 = vmatmul.f32.gmra.mxu0 %v2465_v27  ;;  %1665 = vmatmul.msk.f32.gmra.mxu2 %vm498_vm1, %v2013_v49  ;;  %v744_v49 = vadd.f32 %v743_v47, %v2683_v57 }
 0x198   : > { %v1359_v62 = vadd.f32 %v2886_v37, %v1339_v15 }
 0x199   : > { %v944_v18 = vadd.f32 %v2728_v40, %v744_v49 }
 0x19a   : > { %v2894_v41 = vpop.f32.mrf.mxu2  ;;  %vm1391_vm3 = vcmp.gt.f32.partialorder %v1359_v62, 0.0  ;;  %v1407_v60 = vmul.f32 0.01, %v1359_v62 }
 0x19b   : > { %v1229_v26 = vpop.f32.mrf.mxu1  ;;  %v1009_v45 = vadd.f32 %v2633_v54, %v944_v18 }
 0x19c   : > { %v746_v27 = vpop.f32.mrf.mxu0  ;;  %v1423_v3 = vsel %vm1391_vm3, %v1359_v62, %v1407_v60  ;;  %v1295_v14 = vadd.f32 %v1294_v12, %v1229_v26  ;;  %v3085_v26 = vld [vmem:[#allocation25_spill] sm:$0xff] }
 0x19d   : > { %1487 = vst [vmem:[%s2899_s30] sm:$0xff] %v1423_v3  ;;  %v747_v0 = vadd.f32 %v746_v27, %v2705_v58 }
 0x19e   : > { %v1340_v17 = vadd.f32 %v1295_v14, %v1006_v53 }
 0x19f   : > { %1102 = vmatmul.f32.gmra.mxu0 %v2482_v51  ;;  %1666 = vmatmul.msk.f32.gmra.mxu2 %vm498_vm1, %v2067_v22  ;;  %v1306_v22 = vpop.f32.mrf.mxu3  ;;  %v947_v36 = vadd.f32 %v2743_v30, %v747_v0 }
 0x1a0   : > { %v1360_v9 = vadd.f32 %v2886_v37, %v1340_v17 }
 0x1a2   : > { %v2909_v52 = vpop.f32.mrf.mxu2  ;;  %vm1392_vm4 = vcmp.gt.f32.partialorder %v1360_v9, 0.0  ;;  %v1408_v57 = vmul.f32 0.01, %v1360_v9 }
 0x1a3   : > { %v1232_v48 = vpop.f32.mrf.mxu1 }
 0x1a4   : > { %v749_v61 = vpop.f32.mrf.mxu0  ;;  %v1424_v12 = vsel %vm1392_vm4, %v1360_v9, %v1408_v57  ;;  %v1298_v51 = vadd.f32 %v1297_v16, %v1232_v48  ;;  %v3088_v48 = vld [vmem:[#allocation13_spill] sm:$0xff] }
 0x1a5   : > { %1488 = vst [vmem:[%s2899_s30 + $0x8] sm:$0xff] %v1424_v12  ;;  %v750_v16 = vadd.f32 %v749_v61, %v2726_v38  ;;  %v868_v0 = vadd.f32 %v2868_v21, %v3088_v48  ;;  %v3090_v21 = vld [vmem:[#allocation18_spill] sm:$0xff] }
 0x1a6   : > { %v1341_v40 = vadd.f32 %v1298_v51, %v1009_v45  ;;  %v3089_v51 = vld [vmem:[#allocation27_spill] sm:$0xff] }
 0x1a7   : > { %1105 = vmatmul.f32.gmra.mxu0 %v2502_v10  ;;  %1667 = vmatmul.msk.f32.gmra.mxu2 %vm498_vm1, %v2118_v42  ;;  %v1012_v10 = vadd.f32 %v2660_v24, %v947_v36  ;;  %v1309_v30 = vpop.f32.mrf.mxu3  ;;  %v950_v4 = vadd.f32 %v2758_v33, %v750_v16 }
 0x1a8   : > { %v1361_v31 = vadd.f32 %v2886_v37, %v1341_v40 }
 0x1aa   : > { %v2919_v47 = vpop.f32.mrf.mxu2  ;;  %vm1393_vm5 = vcmp.gt.f32.partialorder %v1361_v31, 0.0  ;;  %v1409_v58 = vmul.f32 0.01, %v1361_v31 }
 0x1ab   : > { %v1235_v54 = vpop.f32.mrf.mxu1 }
 0x1ac   : > { %v752_v46 = vpop.f32.mrf.mxu0  ;;  %v1425_v25 = vsel %vm1393_vm5, %v1361_v31, %v1409_v58  ;;  %v1301_v11 = vadd.f32 %v1300_v2, %v1235_v54 }
 0x1ad   : > { %1489 = vst [vmem:[%s2899_s30 + $0x20] sm:$0xff] %v1425_v25  ;;  %v753_v2 = vadd.f32 %v752_v46, %v2741_v43 }
 0x1ae   : > { %v1342_v42 = vadd.f32 %v1301_v11, %v1012_v10 }
 0x1af   : > { %1108 = vmatmul.f32.gmra.mxu0 %v2517_v35  ;;  %1668 = vmatmul.msk.f32.gmra.mxu2 %vm498_vm1, %v2151_v55  ;;  %v1015_v35 = vadd.f32 %v2686_v44, %v950_v4  ;;  %v3084_v55 = vld [vmem:[#allocation2_spill] sm:$0xff]  ;;  %v953_v49 = vadd.f32 %v3085_v26, %v753_v2  ;;  %v1312_v14 = vpop.f32.mrf.mxu3 }
 0x1b0   : > { %v1362_v15 = vadd.f32 %v2886_v37, %v1342_v42  ;;  %v3091_v4 = vld [vmem:[#allocation14_spill] sm:$0xff] }
 0x1b2   : > { %v2929_v7 = vpop.f32.mrf.mxu2  ;;  %vm1394_vm6 = vcmp.gt.f32.partialorder %v1362_v15, 0.0  ;;  %v1410_v38 = vmul.f32 0.01, %v1362_v15 }
 0x1b3   : > { %v1238_v24 = vpop.f32.mrf.mxu1 }
 0x1b4   : > { %v755_v62 = vpop.f32.mrf.mxu0  ;;  %v1426_v60 = vsel %vm1394_vm6, %v1362_v15, %v1410_v38  ;;  %v1304_v27 = vadd.f32 %v1303_v63, %v1238_v24  ;;  %v3086_v63 = vld [vmem:[#allocation22_spill] sm:$0xff]  ;;  %v871_v15 = vadd.f32 %v2879_v28, %v3091_v4 }
 0x1b5   : > { %1490 = vst [vmem:[%s2899_s30 + $0x28] sm:$0xff] %v1426_v60  ;;  %v756_v18 = vadd.f32 %v755_v62, %v3086_v63  ;;  %v3092_v62 = vld [vmem:[#allocation24_spill] sm:$0xff]  ;;  %v3093_v24 = vld [vmem:[#allocation6_spill] sm:$0xff] }
 0x1b6   : > { %v1343_v33 = vadd.f32 %v1304_v27, %v1015_v35  ;;  %v759_v2 = vadd.f32 %v3093_v24, %v3092_v62 }
 0x1b7   : > { %1111 = vmatmul.f32.gmra.mxu0 %v2542_v8  ;;  %1669 = vmatmul.msk.f32.gmra.mxu2 %vm498_vm1, %v3084_v55  ;;  %v3087_v8 = vld [vmem:[#allocation16_spill] sm:$0xff]  ;;  %v956_v40 = vadd.f32 %v3089_v51, %v756_v18  ;;  %v1315_v25 = vpop.f32.mrf.mxu3  ;;  %v3094_v55 = vld [vmem:[#allocation29_spill] sm:$0xff] }
 0x1b8   : > { %v1363_v3 = vadd.f32 %v2886_v37, %v1343_v33  ;;  %v1018_v57 = vadd.f32 %v3087_v8, %v953_v49  ;;  %v959_v33 = vadd.f32 %v3094_v55, %v759_v2  ;;  %v3096_v8 = vld [vmem:[#allocation15_spill] sm:$0xff] }
 0x1b9   : > { %v1021_v11 = vadd.f32 %v3090_v21, %v956_v40 }
 0x1ba   : > { %v2939_v53 = vpop.f32.mrf.mxu2  ;;  %vm1395_vm7 = vcmp.gt.f32.partialorder %v1363_v3, 0.0  ;;  %v1411_v43 = vmul.f32 0.01, %v1363_v3 }
 0x1bb   : > { %v1241_v44 = vpop.f32.mrf.mxu1 }
 0x1bc   : > { %v1067_v17 = vpop.f32.mrf.mxu0  ;;  %v1427_v9 = vsel %vm1395_vm7, %v1363_v3, %v1411_v43  ;;  %v1307_v61 = vadd.f32 %v1306_v22, %v1241_v44  ;;  %v3095_v44 = vld [vmem:[#allocation20_spill] sm:$0xff] }
 0x1bd   : > { %1491 = vst [vmem:[%s2899_s30 + $0x40] sm:$0xff] %v1427_v9  ;;  %v1068_v45 = vadd.f32 %v1067_v17, %v868_v0  ;;  %v1024_v63 = vadd.f32 %v3095_v44, %v959_v33 }
 0x1be   : > { %v1344_v12 = vadd.f32 %v1307_v61, %v1018_v57  ;;  %v874_v57 = vadd.f32 %v2894_v41, %v3096_v8  ;;  %v3099_v8 = vld [vmem:[#allocation21_spill] sm:$0xff] }
 0x1bf   : > { %v1318_v48 = vpop.f32.mrf.mxu3 }
 0x1c0   : > { %v1364_v36 = vadd.f32 %v2886_v37, %v1344_v12 }
 0x1c2   : > { %v1132_v31 = vpop.f32.mrf.mxu2  ;;  %vm1396_vm8 = vcmp.gt.f32.partialorder %v1364_v36, 0.0  ;;  %v1412_v46 = vmul.f32 0.01, %v1364_v36 }
 0x1c3   : > { %v1133_v58 = vadd.f32 %v1132_v31, %v1068_v45  ;;  %v1244_v22 = vpop.f32.mrf.mxu1 }
 0x1c4   : > { %v1070_v54 = vpop.f32.mrf.mxu0  ;;  %v1428_v10 = vsel %vm1396_vm8, %v1364_v36, %v1412_v46  ;;  %v1310_v42 = vadd.f32 %v1309_v30, %v1244_v22 }
 0x1c5   : > { %v1375_v16 = vadd.f32 %v2886_v37, %v1133_v58  ;;  %1492 = vst [vmem:[%s2899_s30 + $0x48] sm:$0xff] %v1428_v10  ;;  %v1071_v27 = vadd.f32 %v1070_v54, %v871_v15 }
 0x1c6   : > { %v1345_v60 = vadd.f32 %v1310_v42, %v1021_v11 }
 0x1c7   : > { %vm1439_vm9 = vcmp.gt.f32.partialorder %v1375_v16, 0.0  ;;  %v1455_v38 = vmul.f32 0.01, %v1375_v16  ;;  %v1321_v4 = vpop.f32.mrf.mxu3 }
 0x1c8   : > { %v1365_v26 = vadd.f32 %v2886_v37, %v1345_v60 }
 0x1c9   : > { %v1471_v35 = vsel %vm1439_vm9, %v1375_v16, %v1455_v38  ;;  %v3097_v16 = vld [vmem:[#allocation17_spill] sm:$0xff] }
 0x1ca   : > { %1686 = vst [vmem:[%s2899_s30 + $0x10] sm:$0xff] %v1471_v35  ;;  %v1135_v49 = vpop.f32.mrf.mxu2  ;;  %vm1397_vm10 = vcmp.gt.f32.partialorder %v1365_v26, 0.0  ;;  %v1413_v28 = vmul.f32 0.01, %v1365_v26  ;;  %v877_v22 = vadd.f32 %v2909_v52, %v3097_v16 }
 0x1cb   : > { %v1136_v30 = vadd.f32 %v1135_v49, %v1071_v27  ;;  %v1247_v17 = vpop.f32.mrf.mxu1  ;;  %v3098_v27 = vld [vmem:[#allocation19_spill] sm:$0xff] }
 0x1cc   : > { %v1073_v3 = vpop.f32.mrf.mxu0  ;;  %v1429_v18 = vsel %vm1397_vm10, %v1365_v26, %v1413_v28  ;;  %v1313_v9 = vadd.f32 %v1312_v14, %v1247_v17 }
 0x1cd   : > { %v1376_v43 = vadd.f32 %v2886_v37, %v1136_v30  ;;  %1493 = vst [vmem:[%s2899_s30 + $0x60] sm:$0xff] %v1429_v18  ;;  %v1074_v45 = vadd.f32 %v1073_v3, %v874_v57 }
 0x1ce   : > { %v1346_v0 = vadd.f32 %v1313_v9, %v1024_v63 }
 0x1cf   : > { %vm1440_vm11 = vcmp.gt.f32.partialorder %v1376_v43, 0.0  ;;  %v1456_v61 = vmul.f32 0.01, %v1376_v43 }
 0x1d0   : > { %v1366_v51 = vadd.f32 %v2886_v37, %v1346_v0 }
 0x1d1   : > { %v1472_v12 = vsel %vm1440_vm11, %v1376_v43, %v1456_v61  ;;  %v1324_v43 = vpop.f32.mrf.mxu3 }
 0x1d2   : > { %1687 = vst [vmem:[%s2899_s30 + $0x18] sm:$0xff] %v1472_v12  ;;  %v1138_v40 = vpop.f32.mrf.mxu2  ;;  %vm1398_vm12 = vcmp.gt.f32.partialorder %v1366_v51, 0.0  ;;  %v1414_v31 = vmul.f32 0.01, %v1366_v51 }
 0x1d3   : > { %v1139_v36 = vadd.f32 %v1138_v40, %v1074_v45  ;;  %v1250_v41 = vpop.f32.mrf.mxu1 }
 0x1d4   : > { %v1076_v14 = vpop.f32.mrf.mxu0  ;;  %v1430_v46 = vsel %vm1398_vm12, %v1366_v51, %v1414_v31  ;;  %v1316_v54 = vadd.f32 %v1315_v25, %v1250_v41 }
 0x1d5   : > { %v1377_v58 = vadd.f32 %v2886_v37, %v1139_v36  ;;  %1494 = vst [vmem:[%s2899_s30 + $0x68] sm:$0xff] %v1430_v46  ;;  %v1077_v42 = vadd.f32 %v1076_v14, %v877_v22  ;;  %v3100_v46 = vld [vmem:[#allocation23_spill] sm:$0xff] }
 0x1d6   : > { %v1347_v21 = vadd.f32 %v1316_v54, %v2805_v32  ;;  %v880_v32 = vadd.f32 %v2919_v47, %v3098_v27 }
 0x1d7   : > { %vm1441_vm13 = vcmp.gt.f32.partialorder %v1377_v58, 0.0  ;;  %v1457_v10 = vmul.f32 0.01, %v1377_v58 }
 0x1d8   : > { %v1367_v15 = vadd.f32 %v2886_v37, %v1347_v21 }
 0x1d9   : > { %v1473_v11 = vsel %vm1441_vm13, %v1377_v58, %v1457_v10  ;;  %v1327_v14 = vpop.f32.mrf.mxu3 }
 0x1da   : > { %1688 = vst [vmem:[%s2899_s30 + $0x30] sm:$0xff] %v1473_v11  ;;  %v1141_v38 = vpop.f32.mrf.mxu2  ;;  %vm1399_vm14 = vcmp.gt.f32.partialorder %v1367_v15, 0.0  ;;  %v1415_v25 = vmul.f32 0.01, %v1367_v15 }
 0x1db   : > { %v1142_v62 = vadd.f32 %v1141_v38, %v1077_v42  ;;  %v1253_v2 = vpop.f32.mrf.mxu1 }
 0x1dc   : > { %v1079_v24 = vpop.f32.mrf.mxu0  ;;  %v1431_v60 = vsel %vm1399_vm14, %v1367_v15, %v1415_v25  ;;  %v1319_v35 = vadd.f32 %v1318_v48, %v1253_v2 }
 0x1dd   : > { %v1378_v52 = vadd.f32 %v2886_v37, %v1142_v62  ;;  %1495 = vst [vmem:[%s2899_s30 + $0x80] sm:$0xff] %v1431_v60  ;;  %v1080_v49 = vadd.f32 %v1079_v24, %v880_v32  ;;  %v3101_v24 = vld [vmem:[#allocation26_spill] sm:$0xff] }
 0x1de   : > { %v1348_v33 = vadd.f32 %v1319_v35, %v2816_v56  ;;  %v883_v56 = vadd.f32 %v2929_v7, %v3099_v8 }
 0x1df   : > { %vm1442_vm15 = vcmp.gt.f32.partialorder %v1378_v52, 0.0  ;;  %v1458_v55 = vmul.f32 0.01, %v1378_v52 }
 0x1e0   : > { %v1368_v30 = vadd.f32 %v2886_v37, %v1348_v33 }
 0x1e1   : > { %v1474_v26 = vsel %vm1442_vm15, %v1378_v52, %v1458_v55  ;;  %v3102_v52 = vld [vmem:[#allocation3_spill] sm:$0xff]  ;;  %v1330_v60 = vpop.f32.mrf.mxu3 }
 0x1e2   : > { %1689 = vst [vmem:[%s2899_s30 + $0x38] sm:$0xff] %v1474_v26  ;;  %v1144_v28 = vpop.f32.mrf.mxu2  ;;  %vm1400_vm0 = vcmp.gt.f32.partialorder %v1368_v30, 0.0  ;;  %v1416_v17 = vmul.f32 0.01, %v1368_v30  ;;  %v889_v2 = vadd.f32 %v3102_v52, %v3101_v24 }
 0x1e3   : > { %v1145_v3 = vadd.f32 %v1144_v28, %v1080_v49  ;;  %v1256_v63 = vpop.f32.mrf.mxu1 }
 0x1e4   : > { %v1082_v44 = vpop.f32.mrf.mxu0  ;;  %v1432_v18 = vsel %vm1400_vm0, %v1368_v30, %v1416_v17  ;;  %v1322_v9 = vadd.f32 %v1321_v4, %v1256_v63 }
 0x1e5   : > { %v1379_v47 = vadd.f32 %v2886_v37, %v1145_v3  ;;  %1496 = vst [vmem:[%s2899_s30 + $0x88] sm:$0xff] %v1432_v18  ;;  %v1083_v0 = vadd.f32 %v1082_v44, %v883_v56  ;;  %v3103_v44 = vld [vmem:[#allocation28_spill] sm:$0xff] }
 0x1e6   : > { %v1349_v61 = vadd.f32 %v1322_v9, %v2827_v50  ;;  %v886_v50 = vadd.f32 %v2939_v53, %v3100_v46 }
 0x1e7   : > { %vm1443_vm1 = vcmp.gt.f32.partialorder %v1379_v47, 0.0  ;;  %v1459_v57 = vmul.f32 0.01, %v1379_v47 }
 0x1e8   : > { %v1369_v12 = vadd.f32 %v2886_v37, %v1349_v61 }
 0x1e9   : > { %v1475_v48 = vsel %vm1443_vm1, %v1379_v47, %v1459_v57  ;;  %v3104_v47 = vld [vmem:[#allocation4_spill] sm:$0xff]  ;;  %v1333_v56 = vpop.f32.mrf.mxu3 }
 0x1ea   : > { %1690 = vst [vmem:[%s2899_s30 + $0x50] sm:$0xff] %v1475_v48  ;;  %v1147_v45 = vpop.f32.mrf.mxu2  ;;  %vm1401_vm2 = vcmp.gt.f32.partialorder %v1369_v12, 0.0  ;;  %v1417_v40 = vmul.f32 0.01, %v1369_v12  ;;  %v892_v63 = vadd.f32 %v3104_v47, %v3103_v44 }
 0x1eb   : > { %v1148_v51 = vadd.f32 %v1147_v45, %v1083_v0  ;;  %v1259_v7 = vpop.f32.mrf.mxu1 }
 0x1ec   : > { %v1085_v36 = vpop.f32.mrf.mxu0  ;;  %v1433_v58 = vsel %vm1401_vm2, %v1369_v12, %v1417_v40  ;;  %v1325_v41 = vadd.f32 %v1324_v43, %v1259_v7 }
 0x1ed   : > { %v1380_v31 = vadd.f32 %v2886_v37, %v1148_v51  ;;  %1497 = vst [vmem:[%s2899_s30 + $0xa0] sm:$0xff] %v1433_v58  ;;  %v1086_v10 = vadd.f32 %v1085_v36, %v886_v50 }
 0x1ee   : > { %v1350_v16 = vadd.f32 %v1325_v41, %v2838_v59 }
 0x1ef   : > { %vm1444_vm3 = vcmp.gt.f32.partialorder %v1380_v31, 0.0  ;;  %v1460_v54 = vmul.f32 0.01, %v1380_v31 }
 0x1f0   : > { %v1370_v21 = vadd.f32 %v2886_v37, %v1350_v16 }
 0x1f1   : > { %v1476_v22 = vsel %vm1444_vm3, %v1380_v31, %v1460_v54  ;;  %v3105_v31 = vld [vmem:[#allocation30_spill] sm:$0xff] }
 0x1f2   : > { %1691 = vst [vmem:[%s2899_s30 + $0x58] sm:$0xff] %v1476_v22  ;;  %v1150_v11 = vpop.f32.mrf.mxu2  ;;  %vm1402_vm4 = vcmp.gt.f32.partialorder %v1370_v21, 0.0  ;;  %v1418_v4 = vmul.f32 0.01, %v1370_v21  ;;  %v1336_v22 = vpop.f32.mrf.mxu3 }
 0x1f3   : > { %v1151_v42 = vadd.f32 %v1150_v11, %v1086_v10  ;;  %v1262_v53 = vpop.f32.mrf.mxu1 }
 0x1f4   : > { %v1088_v15 = vpop.f32.mrf.mxu0  ;;  %v1434_v62 = vsel %vm1402_vm4, %v1370_v21, %v1418_v4  ;;  %v1328_v25 = vadd.f32 %v1327_v14, %v1262_v53 }
 0x1f5   : > { %v1381_v38 = vadd.f32 %v2886_v37, %v1151_v42  ;;  %1498 = vst [vmem:[%s2899_s30 + $0xa8] sm:$0xff] %v1434_v62  ;;  %v1089_v32 = vadd.f32 %v1088_v15, %v889_v2 }
 0x1f6   : > { %v1351_v35 = vadd.f32 %v1328_v25, %v2847_v29 }
 0x1f7   : > { %vm1445_vm5 = vcmp.gt.f32.partialorder %v1381_v38, 0.0  ;;  %v1461_v59 = vmul.f32 0.01, %v1381_v38 }
 0x1f8   : > { %v1371_v55 = vadd.f32 %v2886_v37, %v1351_v35 }
 0x1f9   : > { %v1477_v27 = vsel %vm1445_vm5, %v1381_v38, %v1461_v59 }
 0x1fa   : > { %1692 = vst [vmem:[%s2899_s30 + $0x70] sm:$0xff] %v1477_v27  ;;  %v1153_v33 = vpop.f32.mrf.mxu2  ;;  %vm1403_vm6 = vcmp.gt.f32.partialorder %v1371_v55, 0.0  ;;  %v1419_v49 = vmul.f32 0.01, %v1371_v55 }
 0x1fb   : > { %v1154_v26 = vadd.f32 %v1153_v33, %v1089_v32  ;;  %v1265_v3 = vpop.f32.mrf.mxu1  ;;  %v3108_v32 = vld [vmem:[#allocation8_spill] sm:$0xff] }
 0x1fc   : > { %v1091_v30 = vpop.f32.mrf.mxu0  ;;  %v1435_v43 = vsel %vm1403_vm6, %v1371_v55, %v1419_v49  ;;  %v1331_v17 = vadd.f32 %v1330_v60, %v1265_v3  ;;  %v901_v55 = vadd.f32 %v3108_v32, %v2819_v34 }
 0x1fd   : > { %v1382_v28 = vadd.f32 %v2886_v37, %v1154_v26  ;;  %1499 = vst [vmem:[%s2899_s30 + $0xc0] sm:$0xff] %v1435_v43  ;;  %v1092_v8 = vadd.f32 %v1091_v30, %v892_v63  ;;  %v3109_v43 = vld [vmem:[#allocation9_spill] sm:$0xff] }
 0x1fe   : > { %v1352_v18 = vadd.f32 %v1331_v17, %v2856_v19  ;;  %v3106_v19 = vld [vmem:[#allocation5_spill] sm:$0xff]  ;;  %v904_v17 = vadd.f32 %v3109_v43, %v2830_v20 }
 0x1ff   : > { %vm1446_vm7 = vcmp.gt.f32.partialorder %v1382_v28, 0.0  ;;  %v1462_v29 = vmul.f32 0.01, %v1382_v28  ;;  %v895_v7 = vadd.f32 %v3106_v19, %v3105_v31 }
 0x200   : > { %v1372_v57 = vadd.f32 %v2886_v37, %v1352_v18 }
 0x201   : > { %v1478_v9 = vsel %vm1446_vm7, %v1382_v28, %v1462_v29 }
 0x202   : > { %1693 = vst [vmem:[%s2899_s30 + $0x78] sm:$0xff] %v1478_v9  ;;  %v1156_v61 = vpop.f32.mrf.mxu2  ;;  %vm1404_vm8 = vcmp.gt.f32.partialorder %v1372_v57, 0.0  ;;  %v1420_v0 = vmul.f32 0.01, %v1372_v57 }
 0x203   : > { %v1157_v48 = vadd.f32 %v1156_v61, %v1092_v8  ;;  %v1268_v51 = vpop.f32.mrf.mxu1  ;;  %v3110_v8 = vld [vmem:[#allocation10_spill] sm:$0xff] }
 0x204   : > { %v1094_v12 = vpop.f32.mrf.mxu0  ;;  %v1436_v40 = vsel %vm1404_vm8, %v1372_v57, %v1420_v0  ;;  %v1334_v36 = vadd.f32 %v1333_v56, %v1268_v51  ;;  %v907_v56 = vadd.f32 %v3110_v8, %v2841_v1  ;;  %v3111_v51 = vld [vmem:[#allocation11_spill] sm:$0xff] }
 0x205   : > { %v1383_v45 = vadd.f32 %v2886_v37, %v1157_v48  ;;  %1500 = vst [vmem:[%s2899_s30 + $0xc8] sm:$0xff] %v1436_v40  ;;  %v1095_v46 = vadd.f32 %v1094_v12, %v895_v7  ;;  %v910_v40 = vadd.f32 %v3111_v51, %v2850_v5 }
 0x206   : > { %v1353_v58 = vadd.f32 %v1334_v36, %v2865_v13  ;;  %v3107_v13 = vld [vmem:[#allocation7_spill] sm:$0xff] }
 0x207   : > { %vm1447_vm9 = vcmp.gt.f32.partialorder %v1383_v45, 0.0  ;;  %v1463_v14 = vmul.f32 0.01, %v1383_v45  ;;  %v898_v38 = vadd.f32 %v3107_v13, %v2808_v39 }
 0x208   : > { %v1373_v50 = vadd.f32 %v2886_v37, %v1353_v58 }
 0x209   : > { %v1479_v41 = vsel %vm1447_vm9, %v1383_v45, %v1463_v14 }
 0x20a   : > { %1694 = vst [vmem:[%s2899_s30 + $0x90] sm:$0xff] %v1479_v41  ;;  %v1159_v54 = vpop.f32.mrf.mxu2  ;;  %vm1405_vm10 = vcmp.gt.f32.partialorder %v1373_v50, 0.0  ;;  %v1421_v10 = vmul.f32 0.01, %v1373_v50  ;;  %v3112_v41 = vld [vmem:[#allocation12_spill] sm:$0xff] }
 0x20b   : > { %v1160_v16 = vadd.f32 %v1159_v54, %v1095_v46  ;;  %v1271_v42 = vpop.f32.mrf.mxu1  ;;  %v913_v46 = vadd.f32 %v3112_v41, %v2859_v6 }
 0x20c   : > { %v1097_v21 = vpop.f32.mrf.mxu0  ;;  %v1437_v4 = vsel %vm1405_vm10, %v1373_v50, %v1421_v10  ;;  %v1337_v15 = vadd.f32 %v1336_v22, %v1271_v42 }
 0x20d   : > { %v1384_v11 = vadd.f32 %v2886_v37, %v1160_v16  ;;  %1501 = vst [vmem:[%s2899_s30 + $0xe0] sm:$0xff] %v1437_v4  ;;  %v1098_v24 = vadd.f32 %v1097_v21, %v898_v38 }
 0x20e   : > { %v1354_v62 = vadd.f32 %v1337_v15, %v2875_v23 }
 0x20f   : > { %vm1448_vm11 = vcmp.gt.f32.partialorder %v1384_v11, 0.0  ;;  %v1464_v53 = vmul.f32 0.01, %v1384_v11 }
 0x210   : > { %v1374_v52 = vadd.f32 %v2886_v37, %v1354_v62 }
 0x211   : > { %v1480_v25 = vsel %vm1448_vm11, %v1384_v11, %v1464_v53 }
 0x212   : > { %1695 = vst [vmem:[%s2899_s30 + $0x98] sm:$0xff] %v1480_v25  ;;  %v1162_v2 = vpop.f32.mrf.mxu2  ;;  %vm1406_vm12 = vcmp.gt.f32.partialorder %v1374_v52, 0.0  ;;  %v1422_v60 = vmul.f32 0.01, %v1374_v52 }
 0x213   : > { %v1163_v59 = vadd.f32 %v1162_v2, %v1098_v24 }
 0x214   : > { %v1100_v35 = vpop.f32.mrf.mxu0  ;;  %v1438_v39 = vsel %vm1406_vm12, %v1374_v52, %v1422_v60 }
 0x215   : > { %v1385_v27 = vadd.f32 %v2886_v37, %v1163_v59  ;;  %1502 = vst [vmem:[%s2899_s30 + $0xe8] sm:$0xff] %v1438_v39  ;;  %v1101_v26 = vadd.f32 %v1100_v35, %v901_v55 }
 0x217   : > { %vm1449_vm13 = vcmp.gt.f32.partialorder %v1385_v27, 0.0  ;;  %v1465_v23 = vmul.f32 0.01, %v1385_v27 }
 0x219   : > { %v1481_v33 = vsel %vm1449_vm13, %v1385_v27, %v1465_v23 }
 0x21a   : > { %1696 = vst [vmem:[%s2899_s30 + $0xb0] sm:$0xff] %v1481_v33  ;;  %v1165_v49 = vpop.f32.mrf.mxu2 }
 0x21b   : > { %v1166_v30 = vadd.f32 %v1165_v49, %v1101_v26 }
 0x21c   : > { %v1103_v28 = vpop.f32.mrf.mxu0 }
 0x21d   : > { %v1386_v3 = vadd.f32 %v2886_v37, %v1166_v30  ;;  %v1104_v34 = vadd.f32 %v1103_v28, %v904_v17 }
 0x21f   : > { %vm1450_vm14 = vcmp.gt.f32.partialorder %v1386_v3, 0.0  ;;  %v1466_v44 = vmul.f32 0.01, %v1386_v3 }
 0x221   : > { %v1482_v47 = vsel %vm1450_vm14, %v1386_v3, %v1466_v44 }
 0x222   : > { %1697 = vst [vmem:[%s2899_s30 + $0xb8] sm:$0xff] %v1482_v47  ;;  %v1168_v63 = vpop.f32.mrf.mxu2 }
 0x223   : > { %v1169_v29 = vadd.f32 %v1168_v63, %v1104_v34 }
 0x224   : > { %v1106_v18 = vpop.f32.mrf.mxu0 }
 0x225   : > { %v1387_v9 = vadd.f32 %v2886_v37, %v1169_v29  ;;  %v1107_v48 = vadd.f32 %v1106_v18, %v907_v56 }
 0x227   : > { %vm1451_vm15 = vcmp.gt.f32.partialorder %v1387_v9, 0.0  ;;  %v1467_v57 = vmul.f32 0.01, %v1387_v9 }
 0x229   : > { %v1483_v61 = vsel %vm1451_vm15, %v1387_v9, %v1467_v57 }
 0x22a   : > { %1698 = vst [vmem:[%s2899_s30 + $0xd0] sm:$0xff] %v1483_v61  ;;  %v1171_v20 = vpop.f32.mrf.mxu2 }
 0x22b   : > { %v1172_v0 = vadd.f32 %v1171_v20, %v1107_v48 }
 0x22c   : > { %v1109_v12 = vpop.f32.mrf.mxu0 }
 0x22d   : > { %v1388_v45 = vadd.f32 %v2886_v37, %v1172_v0  ;;  %v1110_v19 = vadd.f32 %v1109_v12, %v910_v40 }
 0x22f   : > { %vm1452_vm0 = vcmp.gt.f32.partialorder %v1388_v45, 0.0  ;;  %v1468_v36 = vmul.f32 0.01, %v1388_v45 }
 0x231   : > { %v1484_v31 = vsel %vm1452_vm0, %v1388_v45, %v1468_v36 }
 0x232   : > { %1699 = vst [vmem:[%s2899_s30 + $0xd8] sm:$0xff] %v1484_v31  ;;  %v1174_v1 = vpop.f32.mrf.mxu2 }
 0x233   : > { %v1175_v7 = vadd.f32 %v1174_v1, %v1110_v19 }
 0x234   : > { %v1112_v58 = vpop.f32.mrf.mxu0 }
 0x235   : > { %v1389_v14 = vadd.f32 %v2886_v37, %v1175_v7  ;;  %v1113_v16 = vadd.f32 %v1112_v58, %v913_v46 }
 0x237   : > { %vm1453_vm1 = vcmp.gt.f32.partialorder %v1389_v14, 0.0  ;;  %v1469_v50 = vmul.f32 0.01, %v1389_v14 }
 0x239   : > { %v1485_v54 = vsel %vm1453_vm1, %v1389_v14, %v1469_v50 }
 0x23a   : > { %1700 = vst [vmem:[%s2899_s30 + $0xf0] sm:$0xff] %v1485_v54  ;;  %v1177_v5 = vpop.f32.mrf.mxu2 }
 0x23b   : > { %v1178_v22 = vadd.f32 %v1177_v5, %v1113_v16 }
 0x23d   : > { %v1390_v10 = vadd.f32 %v2886_v37, %v1178_v22 }
 0x23f   : > { %vm1454_vm2 = vcmp.gt.f32.partialorder %v1390_v10, 0.0  ;;  %v1470_v21 = vmul.f32 0.01, %v1390_v10 }
 0x241   : > { %v1486_v11 = vsel %vm1454_vm2, %v1390_v10, %v1470_v21 }
 0x242   : > { %1701 = vst [vmem:[%s2899_s30 + $0xf8] sm:$0xff] %v1486_v11 }
 0x243 PF: > { %s16_s21 = sadd.s32 1, %s1739_s21  }
 0x244   : > { %p13_p5 = scmp.ge.s32.totalorder %s16_s21, 6  }
 0x246   :  { %15 = sbr.rel (!%p13_p5) target bundleno = 1 (0x1), region = 79 }

</bundles_post_ra>
